<compile_context>
chip_gen: v6e
topology: v6e:2x2x1
jax: 0.10.0
libtpu: 0.0.40
codegen_flags: <defaults>
</compile_context>

<pallas_src>
import jax
import jax.numpy as jnp
import numpy as np
from jax import lax
from jax.experimental import pallas as pl
from jax.experimental.pallas import tpu as pltpu


def narm_kernel(x_ref, lmask_ref, last_ref, mask_ref,
                wih_ref, whh_ref, bih_ref, bhh_ref,
                wag_ref, wal_ref, v_ref, wbg_ref, wbl_ref,
                embt_ref,
                scores_ref,
                gi_ref, gru_ref, tmp_ref):
    T, B, H = gru_ref.shape

    # Grid axis 0 tiles the vocabulary; it is "arbitrary" (sequential), so the
    # sequence/attention work runs once at tile 0 and its result persists in
    # the tmp_ref scratch for the remaining vocab tiles.
    @pl.when(pl.program_id(0) == 0)
    def _():
        # ---- hoisted input projection: one big MXU op instead of T tiny ones
        gi_ref[...] = (jnp.dot(x_ref[...], wih_ref[...],
                               preferred_element_type=jnp.float32)
                       + bih_ref[...])                                    # (T*B, 3H)

        # ---- GRU recurrence (only h @ W_hh on the serial critical path).
        def gru_step(t, h):
            gi = gi_ref[pl.ds(t * B, B), :]                               # (B, 3H)
            gh = (jnp.dot(h, whh_ref[...], preferred_element_type=jnp.float32)
                  + bhh_ref[...])
            r = jax.nn.sigmoid(gi[:, 0:H] + gh[:, 0:H])
            z = jax.nn.sigmoid(gi[:, H:2 * H] + gh[:, H:2 * H])
            n = jnp.tanh(gi[:, 2 * H:3 * H] + r * gh[:, 2 * H:3 * H])
            h_new = (1.0 - z) * n + z * h
            gru_ref[t] = h_new
            return h_new

        h = jnp.zeros((B, H), jnp.float32)
        if T <= 64:                     # fully unrolled: scheduler sees across steps
            for t in range(T):
                h = gru_step(t, h)
        else:                           # fallback for long sequences
            lax.fori_loop(0, T, gru_step, h)

        # ---- packed-sequence semantics (pad_packed zero-fill + hidden[-1])
        lm = lmask_ref[...]                                               # (T, B)
        g_all = gru_ref[...] * lm[:, :, None]                             # (T, B, H)
        c_global = jnp.sum(last_ref[...][:, :, None] * g_all, axis=0)     # (B, H)

        # ---- NARM attention, vectorized over all (T, B) at once
        g2 = g_all.reshape(T * B, H)
        state2 = jnp.dot(g2, wal_ref[...],
                         preferred_element_type=jnp.float32).reshape(T, B, H)
        state1 = jnp.dot(c_global, wag_ref[...],
                         preferred_element_type=jnp.float32)              # (B, H)
        m = mask_ref[...]                                                 # (T, B)
        alpha = jnp.clip((m[:, :, None] * state1[None, :, :] + state2) / 6.0 + 0.5,
                         0.0, 1.0)                                        # HardSigmoid
        logits = jnp.sum(alpha * v_ref[...][None, :, :], axis=-1)         # (T, B)
        logits = jnp.where(m == 0.0, jnp.float32(-1e9), logits)
        mx = jnp.max(logits, axis=0, keepdims=True)
        ex = jnp.exp(logits - mx)
        attn = ex * pl.reciprocal(jnp.sum(ex, axis=0, keepdims=True), approx=True)
        c_local = jnp.sum(attn[:, :, None] * g_all, axis=0)               # (B, H)

        # ---- reassociated projection: tmp = [c_global, c_local] @ W_b -> (B, E)
        tmp = (jnp.dot(c_global, wbg_ref[...], preferred_element_type=jnp.float32)
               + jnp.dot(c_local, wbl_ref[...], preferred_element_type=jnp.float32))
        tmp_ref[...] = tmp.astype(tmp_ref.dtype)

    # ---- per-vocab-tile scores: (B, E) @ (E, TV), bf16 in / f32 accumulate
    scores_ref[...] = jnp.dot(tmp_ref[...], embt_ref[...],
                              preferred_element_type=jnp.float32)


def _round_up(x, m):
    return ((x + m - 1) // m) * m


def narm_forward(x_ids, lengths, params):
    B, T = x_ids.shape
    V, E = params["emb"].shape
    H = params["w_hh"].shape[1]

    B_pad = _round_up(B, 8)                 # sublane alignment
    V_pad = _round_up(V, 128)               # lane alignment
    TV = 128
    for cand in (2048, 1024, 512, 256, 128):
        if V_pad % cand == 0:
            TV = cand
            break

    emb = params["emb"]

    if B_pad != B:                           # padded rows get length 0 / id 0
        x_ids = jnp.pad(x_ids, ((0, B_pad - B), (0, 0)))
        lengths = jnp.pad(lengths, (0, B_pad - B))

    # --- glue (plain JAX): embedding gather, masks, transposes (dropout = id) ---
    x_emb = jnp.take(emb, x_ids, axis=0)                        # (B_pad, T, E)
    mask = (x_ids > 0).astype(jnp.float32)                      # attention mask
    pos = jnp.arange(T, dtype=jnp.int32)[None, :]
    lmask = (pos < lengths[:, None]).astype(jnp.float32)        # valid-step mask
    last = (pos == lengths[:, None] - 1).astype(jnp.float32)    # one-hot last step

    x_flat = jnp.transpose(x_emb, (1, 0, 2)).reshape(T * B_pad, E)   # time-major
    mask_t = jnp.transpose(mask)                                 # (T, B_pad)
    lmask_t = jnp.transpose(lmask)
    last_t = jnp.transpose(last)

    wb = params["w_b"]                                           # (2H, E)
    emb_t = jnp.pad(emb.T.astype(jnp.bfloat16), ((0, 0), (0, V_pad - V)))

    args = (
        x_flat, lmask_t, last_t, mask_t,
        params["w_ih"].T, params["w_hh"].T,                      # (E,3H), (H,3H)
        params["b_ih"][None, :], params["b_hh"][None, :],        # (1,3H)
        params["w_ag"].T, params["w_al"].T,                      # (H,H)
        params["w_v"],                                           # (1,H)
        wb[:H], wb[H:],                                          # (H,E) each
        emb_t,                                                   # (E, V_pad) bf16
    )

    def _full(shape):
        return pl.BlockSpec(shape, lambda *_: (0,) * len(shape))

    in_specs = [
        _full((T * B_pad, E)), _full((T, B_pad)), _full((T, B_pad)), _full((T, B_pad)),
        _full((E, 3 * H)), _full((H, 3 * H)), _full((1, 3 * H)), _full((1, 3 * H)),
        _full((H, H)), _full((H, H)), _full((1, H)),
        _full((H, E)), _full((H, E)),
        pl.BlockSpec((E, TV), lambda v: (0, v)),
    ]

    flops = 2 * (T * B_pad * E * 3 * H + T * B_pad * H * 3 * H
                 + T * B_pad * H * H + B_pad * H * H
                 + 2 * B_pad * H * E + B_pad * E * V_pad)
    bytes_accessed = (4 * (T * B_pad * (E + 3) + (E + H) * 3 * H + 2 * H * H
                           + H + 2 * H * E + B_pad * V_pad)
                      + 2 * E * V_pad)

    scores = pl.pallas_call(
        narm_kernel,
        grid=(V_pad // TV,),
        out_shape=jax.ShapeDtypeStruct((B_pad, V_pad), jnp.float32),
        in_specs=in_specs,
        out_specs=pl.BlockSpec((B_pad, TV), lambda v: (0, v)),
        scratch_shapes=[
            pltpu.VMEM((T * B_pad, 3 * H), jnp.float32),         # hoisted GI
            pltpu.VMEM((T, B_pad, H), jnp.float32),              # gru_out (time-major)
            pltpu.VMEM((B_pad, E), jnp.bfloat16),                # [c_g,c_l] @ W_b
        ],
        compiler_params=pltpu.CompilerParams(
            dimension_semantics=("arbitrary",),
            vmem_limit_bytes=32 * 1024 * 1024,
        ),
        cost_estimate=pl.CostEstimate(
            flops=flops,
            transcendentals=T * B_pad * (3 * H + 1),
            bytes_accessed=bytes_accessed,
        ),
    )(*args)

    return scores[:B, :V]


def narm_reference(x_ids, lengths, params):
    """Pure-JAX reference mirroring the PyTorch forward (dropout = identity)."""
    B, T = x_ids.shape
    H = params["w_hh"].shape[1]
    emb = params["emb"]
    x_emb = emb[x_ids]
    mask = (x_ids > 0).astype(jnp.float32)
    lmask = (jnp.arange(T)[None, :] < lengths[:, None]).astype(jnp.float32)

    def step(h, inp):
        x_t, lm_t = inp
        gi = x_t @ params["w_ih"].T + params["b_ih"]
        gh = h @ params["w_hh"].T + params["b_hh"]
        r = jax.nn.sigmoid(gi[:, :H] + gh[:, :H])
        z = jax.nn.sigmoid(gi[:, H:2 * H] + gh[:, H:2 * H])
        n = jnp.tanh(gi[:, 2 * H:] + r * gh[:, 2 * H:])
        h_new = (1.0 - z) * n + z * h
        lm = lm_t[:, None]
        return jnp.where(lm > 0, h_new, h), jnp.where(lm > 0, h_new, 0.0)

    c_global, gru_t = lax.scan(step, jnp.zeros((B, H), jnp.float32),
                               (jnp.transpose(x_emb, (1, 0, 2)), lmask.T))
    gru_out = jnp.transpose(gru_t, (1, 0, 2))               # (B, T, H)
    state2 = gru_out @ params["w_al"].T
    state1 = mask[:, :, None] * (c_global @ params["w_ag"].T)[:, None, :]
    alpha = jnp.clip((state1 + state2) / 6.0 + 0.5, 0.0, 1.0)
    attn = (alpha @ params["w_v"].T)[:, :, 0]
    attn = jnp.where(mask == 0, -1e9, attn)
    attn = jax.nn.softmax(attn, axis=-1)
    c_local = jnp.sum(attn[:, :, None] * gru_out, axis=1)
    proj = jnp.concatenate([c_global, c_local], axis=1)
    return proj @ (emb @ params["w_b"].T).T


if __name__ == "__main__":
    # args: num_items=127, bert_hidden_units=32  =>  V=128, E=32, H=2E=64
    NUM_ITEMS, E = 127, 32
    V = NUM_ITEMS + 1
    H = 2 * E
    B, T = 2, 8

    key = jax.random.PRNGKey(0)
    ks = jax.random.split(key, 10)
    # truncated_normal_init: mean 0, std 0.02, truncated at +/- 2 std
    tn = lambda k, s: jax.random.truncated_normal(k, -2.0, 2.0, s, jnp.float32) * 0.02
    params = {
        "emb":  tn(ks[0], (V, E)),          # nn.Embedding(V, E)
        "w_ih": tn(ks[1], (3 * H, E)),      # GRU weight_ih_l0
        "w_hh": tn(ks[2], (3 * H, H)),      # GRU weight_hh_l0
        "b_ih": tn(ks[3], (3 * H,)),        # GRU bias_ih_l0
        "b_hh": tn(ks[4], (3 * H,)),        # GRU bias_hh_l0
        "w_ag": tn(ks[5], (H, H)),          # a_global
        "w_al": tn(ks[6], (H, H)),          # a_local
        "w_v":  tn(ks[7], (1, H)),          # v_vector
        "w_b":  tn(ks[8], (2 * H, E)),      # b_vetor
    }

    lengths = jnp.array([T, 5], dtype=jnp.int32)            # max(lengths) == T
    x_ids = jax.random.randint(ks[9], (B, T), 1, V, dtype=jnp.int32)
    x_ids = jnp.where(jnp.arange(T)[None, :] < lengths[:, None], x_ids, 0)

    scores = jax.block_until_ready(narm_forward(x_ids, lengths, params))
    ref = narm_reference(x_ids, lengths, params)

    assert scores.shape == (B, V)
    assert np.allclose(np.asarray(scores), np.asarray(ref), rtol=1e-2, atol=1e-3)
    print("KERNEL_OK")
</pallas_src>

<mosaic_0001>
module attributes {stable_mosaic.version = 11 : i64} {
  func.func @narm_kernel(%arg0: i32, %arg1: memref<64x32xf32, #tpu.memory_space<vmem>>, %arg2: memref<8x8xf32, #tpu.memory_space<vmem>>, %arg3: memref<8x8xf32, #tpu.memory_space<vmem>>, %arg4: memref<8x8xf32, #tpu.memory_space<vmem>>, %arg5: memref<32x192xf32, #tpu.memory_space<vmem>>, %arg6: memref<64x192xf32, #tpu.memory_space<vmem>>, %arg7: memref<1x192xf32, #tpu.memory_space<vmem>>, %arg8: memref<1x192xf32, #tpu.memory_space<vmem>>, %arg9: memref<64x64xf32, #tpu.memory_space<vmem>>, %arg10: memref<64x64xf32, #tpu.memory_space<vmem>>, %arg11: memref<1x64xf32, #tpu.memory_space<vmem>>, %arg12: memref<64x32xf32, #tpu.memory_space<vmem>>, %arg13: memref<64x32xf32, #tpu.memory_space<vmem>>, %arg14: memref<32x128xbf16, #tpu.memory_space<vmem>>, %arg15: memref<8x128xf32, #tpu.memory_space<vmem>>, %arg16: memref<64x192xf32, #tpu.memory_space<vmem>>, %arg17: memref<8x8x64xf32, #tpu.memory_space<vmem>>, %arg18: memref<8x32xbf16, #tpu.memory_space<vmem>>) attributes {dimension_semantics = [#tpu.dimension_semantics<arbitrary>], iteration_bounds = array<i64: 1>, scalar_prefetch = 0 : i64, scratch_operands = 3 : i64, tpu.core_type = #tpu.core_type<tc>, window_params = [{pipeline_mode = #tpu.pipeline_mode<synchronous>, transform_indices = @transform_0, window_bounds = array<i64: 64, 32>}, {pipeline_mode = #tpu.pipeline_mode<synchronous>, transform_indices = @transform_1, window_bounds = array<i64: 8, 8>}, {pipeline_mode = #tpu.pipeline_mode<synchronous>, transform_indices = @transform_2, window_bounds = array<i64: 8, 8>}, {pipeline_mode = #tpu.pipeline_mode<synchronous>, transform_indices = @transform_3, window_bounds = array<i64: 8, 8>}, {pipeline_mode = #tpu.pipeline_mode<synchronous>, transform_indices = @transform_4, window_bounds = array<i64: 32, 192>}, {pipeline_mode = #tpu.pipeline_mode<synchronous>, transform_indices = @transform_5, window_bounds = array<i64: 64, 192>}, {pipeline_mode = #tpu.pipeline_mode<synchronous>, transform_indices = @transform_6, window_bounds = array<i64: 1, 192>}, {pipeline_mode = #tpu.pipeline_mode<synchronous>, transform_indices = @transform_7, window_bounds = array<i64: 1, 192>}, {pipeline_mode = #tpu.pipeline_mode<synchronous>, transform_indices = @transform_8, window_bounds = array<i64: 64, 64>}, {pipeline_mode = #tpu.pipeline_mode<synchronous>, transform_indices = @transform_9, window_bounds = array<i64: 64, 64>}, {pipeline_mode = #tpu.pipeline_mode<synchronous>, transform_indices = @transform_10, window_bounds = array<i64: 1, 64>}, {pipeline_mode = #tpu.pipeline_mode<synchronous>, transform_indices = @transform_11, window_bounds = array<i64: 64, 32>}, {pipeline_mode = #tpu.pipeline_mode<synchronous>, transform_indices = @transform_12, window_bounds = array<i64: 64, 32>}, {transform_indices = @transform_13, window_bounds = array<i64: 32, 128>}, {transform_indices = @transform_14, window_bounds = array<i64: 8, 128>}]} {
    %c0_i32 = arith.constant 0 : i32
    %0 = arith.cmpi eq, %arg0, %c0_i32 : i32
    %1 = arith.extui %0 : i1 to i32
    %c0_i32_0 = arith.constant 0 : i32
    %2 = arith.cmpi ne, %1, %c0_i32_0 : i32
    scf.if %2 {
      %c0_6 = arith.constant 0 : index
      %c0_7 = arith.constant 0 : index
      %7 = vector.load %arg1[%c0_6, %c0_7] : memref<64x32xf32, #tpu.memory_space<vmem>>, vector<64x32xf32>
      %c0_8 = arith.constant 0 : index
      %c0_9 = arith.constant 0 : index
      %8 = vector.load %arg5[%c0_8, %c0_9] : memref<32x192xf32, #tpu.memory_space<vmem>>, vector<32x192xf32>
      %cst_10 = arith.constant dense<0.000000e+00> : vector<64x192xf32>
      %9 = tpu.matmul %7, %8, %cst_10 {dimension_numbers = #tpu.dot_dimension_numbers<[1], [0], [0], [1], [0, 0, 1, 1], [], []>} : vector<64x32xf32>, vector<32x192xf32>, vector<64x192xf32> -> vector<64x192xf32>
      %c0_11 = arith.constant 0 : index
      %c0_12 = arith.constant 0 : index
      %10 = vector.load %arg7[%c0_11, %c0_12] : memref<1x192xf32, #tpu.memory_space<vmem>>, vector<1x192xf32>
      %11 = vector.broadcast %10 : vector<1x192xf32> to vector<64x192xf32>
      %12 = arith.addf %9, %11 : vector<64x192xf32>
      %c0_13 = arith.constant 0 : index
      %c0_14 = arith.constant 0 : index
      %13 = vector.load %arg16[%c0_13, %c0_14] : memref<64x192xf32, #tpu.memory_space<vmem>>, vector<64x192xf32>
      tpu.vector_store %arg16[%c0_13, %c0_14], %12 {strides = array<i32>} : memref<64x192xf32, #tpu.memory_space<vmem>>, vector<64x192xf32>,
      %cst_15 = arith.constant 0.000000e+00 : f32
      %14 = vector.broadcast %cst_15 : f32 to vector<8x64xf32>
      %c0_16 = arith.constant 0 : index
      %c0_17 = arith.constant 0 : index
      %15 = vector.load %arg16[%c0_16, %c0_17] : memref<64x192xf32, #tpu.memory_space<vmem>>, vector<8x192xf32>
      %c0_18 = arith.constant 0 : index
      %c0_19 = arith.constant 0 : index
      %16 = vector.load %arg6[%c0_18, %c0_19] : memref<64x192xf32, #tpu.memory_space<vmem>>, vector<64x192xf32>
      %cst_20 = arith.constant dense<0.000000e+00> : vector<8x192xf32>
      %17 = tpu.matmul %14, %16, %cst_20 {dimension_numbers = #tpu.dot_dimension_numbers<[1], [0], [0], [1], [0, 0, 1, 1], [], []>} : vector<8x64xf32>, vector<64x192xf32>, vector<8x192xf32> -> vector<8x192xf32>
      %c0_21 = arith.constant 0 : index
      %c0_22 = arith.constant 0 : index
      %18 = vector.load %arg8[%c0_21, %c0_22] : memref<1x192xf32, #tpu.memory_space<vmem>>, vector<1x192xf32>
      %19 = vector.broadcast %18 : vector<1x192xf32> to vector<8x192xf32>
      %20 = arith.addf %17, %19 : vector<8x192xf32>
      %21 = vector.extract_strided_slice %15 {offsets = [0, 0], sizes = [8, 64], strides = [1, 1]} : vector<8x192xf32> to vector<8x64xf32>
      %22 = vector.extract_strided_slice %20 {offsets = [0, 0], sizes = [8, 64], strides = [1, 1]} : vector<8x192xf32> to vector<8x64xf32>
      %23 = arith.addf %21, %22 : vector<8x64xf32>
      %24 = arith.negf %23 : vector<8x64xf32>
      %25 = math.exp %24 : vector<8x64xf32>
      %cst_23 = arith.constant 1.000000e+00 : f32
      %26 = vector.broadcast %cst_23 : f32 to vector<8x64xf32>
      %27 = arith.addf %26, %25 : vector<8x64xf32>
      %28 = arith.divf %26, %27 : vector<8x64xf32>
      %29 = vector.extract_strided_slice %15 {offsets = [0, 64], sizes = [8, 64], strides = [1, 1]} : vector<8x192xf32> to vector<8x64xf32>
      %30 = vector.extract_strided_slice %20 {offsets = [0, 64], sizes = [8, 64], strides = [1, 1]} : vector<8x192xf32> to vector<8x64xf32>
      %31 = arith.addf %29, %30 : vector<8x64xf32>
      %32 = arith.negf %31 : vector<8x64xf32>
      %33 = math.exp %32 : vector<8x64xf32>
      %cst_24 = arith.constant 1.000000e+00 : f32
      %34 = vector.broadcast %cst_24 : f32 to vector<8x64xf32>
      %35 = arith.addf %34, %33 : vector<8x64xf32>
      %36 = arith.divf %34, %35 : vector<8x64xf32>
      %37 = vector.extract_strided_slice %15 {offsets = [0, 128], sizes = [8, 64], strides = [1, 1]} : vector<8x192xf32> to vector<8x64xf32>
      %38 = vector.extract_strided_slice %20 {offsets = [0, 128], sizes = [8, 64], strides = [1, 1]} : vector<8x192xf32> to vector<8x64xf32>
      %39 = arith.mulf %28, %38 : vector<8x64xf32>
      %40 = arith.addf %37, %39 : vector<8x64xf32>
      %41 = math.tanh %40 : vector<8x64xf32>
      %cst_25 = arith.constant 1.000000e+00 : f32
      %42 = vector.broadcast %cst_25 : f32 to vector<8x64xf32>
      %43 = arith.subf %42, %36 : vector<8x64xf32>
      %44 = arith.mulf %43, %41 : vector<8x64xf32>
      %45 = arith.mulf %36, %14 : vector<8x64xf32>
      %46 = arith.addf %44, %45 : vector<8x64xf32>
      %c0_26 = arith.constant 0 : index
      %c0_27 = arith.constant 0 : index
      %c0_28 = arith.constant 0 : index
      %47 = vector.load %arg17[%c0_26, %c0_27, %c0_28] : memref<8x8x64xf32, #tpu.memory_space<vmem>>, vector<1x8x64xf32>
      %48 = vector.shape_cast %47 : vector<1x8x64xf32> to vector<8x64xf32>
      %49 = vector.shape_cast %46 : vector<8x64xf32> to vector<1x8x64xf32>
      tpu.vector_store %arg17[%c0_26, %c0_27, %c0_28], %49 {strides = array<i32>} : memref<8x8x64xf32, #tpu.memory_space<vmem>>, vector<1x8x64xf32>,
      %c8 = arith.constant 8 : index
      %c0_29 = arith.constant 0 : index
      %50 = vector.load %arg16[%c8, %c0_29] : memref<64x192xf32, #tpu.memory_space<vmem>>, vector<8x192xf32>
      %c0_30 = arith.constant 0 : index
      %c0_31 = arith.constant 0 : index
      %51 = vector.load %arg6[%c0_30, %c0_31] : memref<64x192xf32, #tpu.memory_space<vmem>>, vector<64x192xf32>
      %cst_32 = arith.constant dense<0.000000e+00> : vector<8x192xf32>
      %52 = tpu.matmul %46, %51, %cst_32 {dimension_numbers = #tpu.dot_dimension_numbers<[1], [0], [0], [1], [0, 0, 1, 1], [], []>} : vector<8x64xf32>, vector<64x192xf32>, vector<8x192xf32> -> vector<8x192xf32>
      %c0_33 = arith.constant 0 : index
      %c0_34 = arith.constant 0 : index
      %53 = vector.load %arg8[%c0_33, %c0_34] : memref<1x192xf32, #tpu.memory_space<vmem>>, vector<1x192xf32>
      %54 = vector.broadcast %53 : vector<1x192xf32> to vector<8x192xf32>
      %55 = arith.addf %52, %54 : vector<8x192xf32>
      %56 = vector.extract_strided_slice %50 {offsets = [0, 0], sizes = [8, 64], strides = [1, 1]} : vector<8x192xf32> to vector<8x64xf32>
      %57 = vector.extract_strided_slice %55 {offsets = [0, 0], sizes = [8, 64], strides = [1, 1]} : vector<8x192xf32> to vector<8x64xf32>
      %58 = arith.addf %56, %57 : vector<8x64xf32>
      %59 = arith.negf %58 : vector<8x64xf32>
      %60 = math.exp %59 : vector<8x64xf32>
      %cst_35 = arith.constant 1.000000e+00 : f32
      %61 = vector.broadcast %cst_35 : f32 to vector<8x64xf32>
      %62 = arith.addf %61, %60 : vector<8x64xf32>
      %63 = arith.divf %61, %62 : vector<8x64xf32>
      %64 = vector.extract_strided_slice %50 {offsets = [0, 64], sizes = [8, 64], strides = [1, 1]} : vector<8x192xf32> to vector<8x64xf32>
      %65 = vector.extract_strided_slice %55 {offsets = [0, 64], sizes = [8, 64], strides = [1, 1]} : vector<8x192xf32> to vector<8x64xf32>
      %66 = arith.addf %64, %65 : vector<8x64xf32>
      %67 = arith.negf %66 : vector<8x64xf32>
      %68 = math.exp %67 : vector<8x64xf32>
      %cst_36 = arith.constant 1.000000e+00 : f32
      %69 = vector.broadcast %cst_36 : f32 to vector<8x64xf32>
      %70 = arith.addf %69, %68 : vector<8x64xf32>
      %71 = arith.divf %69, %70 : vector<8x64xf32>
      %72 = vector.extract_strided_slice %50 {offsets = [0, 128], sizes = [8, 64], strides = [1, 1]} : vector<8x192xf32> to vector<8x64xf32>
      %73 = vector.extract_strided_slice %55 {offsets = [0, 128], sizes = [8, 64], strides = [1, 1]} : vector<8x192xf32> to vector<8x64xf32>
      %74 = arith.mulf %63, %73 : vector<8x64xf32>
      %75 = arith.addf %72, %74 : vector<8x64xf32>
      %76 = math.tanh %75 : vector<8x64xf32>
      %cst_37 = arith.constant 1.000000e+00 : f32
      %77 = vector.broadcast %cst_37 : f32 to vector<8x64xf32>
      %78 = arith.subf %77, %71 : vector<8x64xf32>
      %79 = arith.mulf %78, %76 : vector<8x64xf32>
      %80 = arith.mulf %71, %46 : vector<8x64xf32>
      %81 = arith.addf %79, %80 : vector<8x64xf32>
      %c1 = arith.constant 1 : index
      %c0_38 = arith.constant 0 : index
      %c0_39 = arith.constant 0 : index
      %82 = vector.load %arg17[%c1, %c0_38, %c0_39] : memref<8x8x64xf32, #tpu.memory_space<vmem>>, vector<1x8x64xf32>
      %83 = vector.shape_cast %82 : vector<1x8x64xf32> to vector<8x64xf32>
      %84 = vector.shape_cast %81 : vector<8x64xf32> to vector<1x8x64xf32>
      tpu.vector_store %arg17[%c1, %c0_38, %c0_39], %84 {strides = array<i32>} : memref<8x8x64xf32, #tpu.memory_space<vmem>>, vector<1x8x64xf32>,
      %c16 = arith.constant 16 : index
      %c0_40 = arith.constant 0 : index
      %85 = vector.load %arg16[%c16, %c0_40] : memref<64x192xf32, #tpu.memory_space<vmem>>, vector<8x192xf32>
      %c0_41 = arith.constant 0 : index
      %c0_42 = arith.constant 0 : index
      %86 = vector.load %arg6[%c0_41, %c0_42] : memref<64x192xf32, #tpu.memory_space<vmem>>, vector<64x192xf32>
      %cst_43 = arith.constant dense<0.000000e+00> : vector<8x192xf32>
      %87 = tpu.matmul %81, %86, %cst_43 {dimension_numbers = #tpu.dot_dimension_numbers<[1], [0], [0], [1], [0, 0, 1, 1], [], []>} : vector<8x64xf32>, vector<64x192xf32>, vector<8x192xf32> -> vector<8x192xf32>
      %c0_44 = arith.constant 0 : index
      %c0_45 = arith.constant 0 : index
      %88 = vector.load %arg8[%c0_44, %c0_45] : memref<1x192xf32, #tpu.memory_space<vmem>>, vector<1x192xf32>
      %89 = vector.broadcast %88 : vector<1x192xf32> to vector<8x192xf32>
      %90 = arith.addf %87, %89 : vector<8x192xf32>
      %91 = vector.extract_strided_slice %85 {offsets = [0, 0], sizes = [8, 64], strides = [1, 1]} : vector<8x192xf32> to vector<8x64xf32>
      %92 = vector.extract_strided_slice %90 {offsets = [0, 0], sizes = [8, 64], strides = [1, 1]} : vector<8x192xf32> to vector<8x64xf32>
      %93 = arith.addf %91, %92 : vector<8x64xf32>
      %94 = arith.negf %93 : vector<8x64xf32>
      %95 = math.exp %94 : vector<8x64xf32>
      %cst_46 = arith.constant 1.000000e+00 : f32
      %96 = vector.broadcast %cst_46 : f32 to vector<8x64xf32>
      %97 = arith.addf %96, %95 : vector<8x64xf32>
      %98 = arith.divf %96, %97 : vector<8x64xf32>
      %99 = vector.extract_strided_slice %85 {offsets = [0, 64], sizes = [8, 64], strides = [1, 1]} : vector<8x192xf32> to vector<8x64xf32>
      %100 = vector.extract_strided_slice %90 {offsets = [0, 64], sizes = [8, 64], strides = [1, 1]} : vector<8x192xf32> to vector<8x64xf32>
      %101 = arith.addf %99, %100 : vector<8x64xf32>
      %102 = arith.negf %101 : vector<8x64xf32>
      %103 = math.exp %102 : vector<8x64xf32>
      %cst_47 = arith.constant 1.000000e+00 : f32
      %104 = vector.broadcast %cst_47 : f32 to vector<8x64xf32>
      %105 = arith.addf %104, %103 : vector<8x64xf32>
      %106 = arith.divf %104, %105 : vector<8x64xf32>
      %107 = vector.extract_strided_slice %85 {offsets = [0, 128], sizes = [8, 64], strides = [1, 1]} : vector<8x192xf32> to vector<8x64xf32>
      %108 = vector.extract_strided_slice %90 {offsets = [0, 128], sizes = [8, 64], strides = [1, 1]} : vector<8x192xf32> to vector<8x64xf32>
      %109 = arith.mulf %98, %108 : vector<8x64xf32>
      %110 = arith.addf %107, %109 : vector<8x64xf32>
      %111 = math.tanh %110 : vector<8x64xf32>
      %cst_48 = arith.constant 1.000000e+00 : f32
      %112 = vector.broadcast %cst_48 : f32 to vector<8x64xf32>
      %113 = arith.subf %112, %106 : vector<8x64xf32>
      %114 = arith.mulf %113, %111 : vector<8x64xf32>
      %115 = arith.mulf %106, %81 : vector<8x64xf32>
      %116 = arith.addf %114, %115 : vector<8x64xf32>
      %c2 = arith.constant 2 : index
      %c0_49 = arith.constant 0 : index
      %c0_50 = arith.constant 0 : index
      %117 = vector.load %arg17[%c2, %c0_49, %c0_50] : memref<8x8x64xf32, #tpu.memory_space<vmem>>, vector<1x8x64xf32>
      %118 = vector.shape_cast %117 : vector<1x8x64xf32> to vector<8x64xf32>
      %119 = vector.shape_cast %116 : vector<8x64xf32> to vector<1x8x64xf32>
      tpu.vector_store %arg17[%c2, %c0_49, %c0_50], %119 {strides = array<i32>} : memref<8x8x64xf32, #tpu.memory_space<vmem>>, vector<1x8x64xf32>,
      %c24 = arith.constant 24 : index
      %c0_51 = arith.constant 0 : index
      %120 = vector.load %arg16[%c24, %c0_51] : memref<64x192xf32, #tpu.memory_space<vmem>>, vector<8x192xf32>
      %c0_52 = arith.constant 0 : index
      %c0_53 = arith.constant 0 : index
      %121 = vector.load %arg6[%c0_52, %c0_53] : memref<64x192xf32, #tpu.memory_space<vmem>>, vector<64x192xf32>
      %cst_54 = arith.constant dense<0.000000e+00> : vector<8x192xf32>
      %122 = tpu.matmul %116, %121, %cst_54 {dimension_numbers = #tpu.dot_dimension_numbers<[1], [0], [0], [1], [0, 0, 1, 1], [], []>} : vector<8x64xf32>, vector<64x192xf32>, vector<8x192xf32> -> vector<8x192xf32>
      %c0_55 = arith.constant 0 : index
      %c0_56 = arith.constant 0 : index
      %123 = vector.load %arg8[%c0_55, %c0_56] : memref<1x192xf32, #tpu.memory_space<vmem>>, vector<1x192xf32>
      %124 = vector.broadcast %123 : vector<1x192xf32> to vector<8x192xf32>
      %125 = arith.addf %122, %124 : vector<8x192xf32>
      %126 = vector.extract_strided_slice %120 {offsets = [0, 0], sizes = [8, 64], strides = [1, 1]} : vector<8x192xf32> to vector<8x64xf32>
      %127 = vector.extract_strided_slice %125 {offsets = [0, 0], sizes = [8, 64], strides = [1, 1]} : vector<8x192xf32> to vector<8x64xf32>
      %128 = arith.addf %126, %127 : vector<8x64xf32>
      %129 = arith.negf %128 : vector<8x64xf32>
      %130 = math.exp %129 : vector<8x64xf32>
      %cst_57 = arith.constant 1.000000e+00 : f32
      %131 = vector.broadcast %cst_57 : f32 to vector<8x64xf32>
      %132 = arith.addf %131, %130 : vector<8x64xf32>
      %133 = arith.divf %131, %132 : vector<8x64xf32>
      %134 = vector.extract_strided_slice %120 {offsets = [0, 64], sizes = [8, 64], strides = [1, 1]} : vector<8x192xf32> to vector<8x64xf32>
      %135 = vector.extract_strided_slice %125 {offsets = [0, 64], sizes = [8, 64], strides = [1, 1]} : vector<8x192xf32> to vector<8x64xf32>
      %136 = arith.addf %134, %135 : vector<8x64xf32>
      %137 = arith.negf %136 : vector<8x64xf32>
      %138 = math.exp %137 : vector<8x64xf32>
      %cst_58 = arith.constant 1.000000e+00 : f32
      %139 = vector.broadcast %cst_58 : f32 to vector<8x64xf32>
      %140 = arith.addf %139, %138 : vector<8x64xf32>
      %141 = arith.divf %139, %140 : vector<8x64xf32>
      %142 = vector.extract_strided_slice %120 {offsets = [0, 128], sizes = [8, 64], strides = [1, 1]} : vector<8x192xf32> to vector<8x64xf32>
      %143 = vector.extract_strided_slice %125 {offsets = [0, 128], sizes = [8, 64], strides = [1, 1]} : vector<8x192xf32> to vector<8x64xf32>
      %144 = arith.mulf %133, %143 : vector<8x64xf32>
      %145 = arith.addf %142, %144 : vector<8x64xf32>
      %146 = math.tanh %145 : vector<8x64xf32>
      %cst_59 = arith.constant 1.000000e+00 : f32
      %147 = vector.broadcast %cst_59 : f32 to vector<8x64xf32>
      %148 = arith.subf %147, %141 : vector<8x64xf32>
      %149 = arith.mulf %148, %146 : vector<8x64xf32>
      %150 = arith.mulf %141, %116 : vector<8x64xf32>
      %151 = arith.addf %149, %150 : vector<8x64xf32>
      %c3 = arith.constant 3 : index
      %c0_60 = arith.constant 0 : index
      %c0_61 = arith.constant 0 : index
      %152 = vector.load %arg17[%c3, %c0_60, %c0_61] : memref<8x8x64xf32, #tpu.memory_space<vmem>>, vector<1x8x64xf32>
      %153 = vector.shape_cast %152 : vector<1x8x64xf32> to vector<8x64xf32>
      %154 = vector.shape_cast %151 : vector<8x64xf32> to vector<1x8x64xf32>
      tpu.vector_store %arg17[%c3, %c0_60, %c0_61], %154 {strides = array<i32>} : memref<8x8x64xf32, #tpu.memory_space<vmem>>, vector<1x8x64xf32>,
      %c32 = arith.constant 32 : index
      %c0_62 = arith.constant 0 : index
      %155 = vector.load %arg16[%c32, %c0_62] : memref<64x192xf32, #tpu.memory_space<vmem>>, vector<8x192xf32>
      %c0_63 = arith.constant 0 : index
      %c0_64 = arith.constant 0 : index
      %156 = vector.load %arg6[%c0_63, %c0_64] : memref<64x192xf32, #tpu.memory_space<vmem>>, vector<64x192xf32>
      %cst_65 = arith.constant dense<0.000000e+00> : vector<8x192xf32>
      %157 = tpu.matmul %151, %156, %cst_65 {dimension_numbers = #tpu.dot_dimension_numbers<[1], [0], [0], [1], [0, 0, 1, 1], [], []>} : vector<8x64xf32>, vector<64x192xf32>, vector<8x192xf32> -> vector<8x192xf32>
      %c0_66 = arith.constant 0 : index
      %c0_67 = arith.constant 0 : index
      %158 = vector.load %arg8[%c0_66, %c0_67] : memref<1x192xf32, #tpu.memory_space<vmem>>, vector<1x192xf32>
      %159 = vector.broadcast %158 : vector<1x192xf32> to vector<8x192xf32>
      %160 = arith.addf %157, %159 : vector<8x192xf32>
      %161 = vector.extract_strided_slice %155 {offsets = [0, 0], sizes = [8, 64], strides = [1, 1]} : vector<8x192xf32> to vector<8x64xf32>
      %162 = vector.extract_strided_slice %160 {offsets = [0, 0], sizes = [8, 64], strides = [1, 1]} : vector<8x192xf32> to vector<8x64xf32>
      %163 = arith.addf %161, %162 : vector<8x64xf32>
      %164 = arith.negf %163 : vector<8x64xf32>
      %165 = math.exp %164 : vector<8x64xf32>
      %cst_68 = arith.constant 1.000000e+00 : f32
      %166 = vector.broadcast %cst_68 : f32 to vector<8x64xf32>
      %167 = arith.addf %166, %165 : vector<8x64xf32>
      %168 = arith.divf %166, %167 : vector<8x64xf32>
      %169 = vector.extract_strided_slice %155 {offsets = [0, 64], sizes = [8, 64], strides = [1, 1]} : vector<8x192xf32> to vector<8x64xf32>
      %170 = vector.extract_strided_slice %160 {offsets = [0, 64], sizes = [8, 64], strides = [1, 1]} : vector<8x192xf32> to vector<8x64xf32>
      %171 = arith.addf %169, %170 : vector<8x64xf32>
      %172 = arith.negf %171 : vector<8x64xf32>
      %173 = math.exp %172 : vector<8x64xf32>
      %cst_69 = arith.constant 1.000000e+00 : f32
      %174 = vector.broadcast %cst_69 : f32 to vector<8x64xf32>
      %175 = arith.addf %174, %173 : vector<8x64xf32>
      %176 = arith.divf %174, %175 : vector<8x64xf32>
      %177 = vector.extract_strided_slice %155 {offsets = [0, 128], sizes = [8, 64], strides = [1, 1]} : vector<8x192xf32> to vector<8x64xf32>
      %178 = vector.extract_strided_slice %160 {offsets = [0, 128], sizes = [8, 64], strides = [1, 1]} : vector<8x192xf32> to vector<8x64xf32>
      %179 = arith.mulf %168, %178 : vector<8x64xf32>
      %180 = arith.addf %177, %179 : vector<8x64xf32>
      %181 = math.tanh %180 : vector<8x64xf32>
      %cst_70 = arith.constant 1.000000e+00 : f32
      %182 = vector.broadcast %cst_70 : f32 to vector<8x64xf32>
      %183 = arith.subf %182, %176 : vector<8x64xf32>
      %184 = arith.mulf %183, %181 : vector<8x64xf32>
      %185 = arith.mulf %176, %151 : vector<8x64xf32>
      %186 = arith.addf %184, %185 : vector<8x64xf32>
      %c4 = arith.constant 4 : index
      %c0_71 = arith.constant 0 : index
      %c0_72 = arith.constant 0 : index
      %187 = vector.load %arg17[%c4, %c0_71, %c0_72] : memref<8x8x64xf32, #tpu.memory_space<vmem>>, vector<1x8x64xf32>
      %188 = vector.shape_cast %187 : vector<1x8x64xf32> to vector<8x64xf32>
      %189 = vector.shape_cast %186 : vector<8x64xf32> to vector<1x8x64xf32>
      tpu.vector_store %arg17[%c4, %c0_71, %c0_72], %189 {strides = array<i32>} : memref<8x8x64xf32, #tpu.memory_space<vmem>>, vector<1x8x64xf32>,
      %c40 = arith.constant 40 : index
      %c0_73 = arith.constant 0 : index
      %190 = vector.load %arg16[%c40, %c0_73] : memref<64x192xf32, #tpu.memory_space<vmem>>, vector<8x192xf32>
      %c0_74 = arith.constant 0 : index
      %c0_75 = arith.constant 0 : index
      %191 = vector.load %arg6[%c0_74, %c0_75] : memref<64x192xf32, #tpu.memory_space<vmem>>, vector<64x192xf32>
      %cst_76 = arith.constant dense<0.000000e+00> : vector<8x192xf32>
      %192 = tpu.matmul %186, %191, %cst_76 {dimension_numbers = #tpu.dot_dimension_numbers<[1], [0], [0], [1], [0, 0, 1, 1], [], []>} : vector<8x64xf32>, vector<64x192xf32>, vector<8x192xf32> -> vector<8x192xf32>
      %c0_77 = arith.constant 0 : index
      %c0_78 = arith.constant 0 : index
      %193 = vector.load %arg8[%c0_77, %c0_78] : memref<1x192xf32, #tpu.memory_space<vmem>>, vector<1x192xf32>
      %194 = vector.broadcast %193 : vector<1x192xf32> to vector<8x192xf32>
      %195 = arith.addf %192, %194 : vector<8x192xf32>
      %196 = vector.extract_strided_slice %190 {offsets = [0, 0], sizes = [8, 64], strides = [1, 1]} : vector<8x192xf32> to vector<8x64xf32>
      %197 = vector.extract_strided_slice %195 {offsets = [0, 0], sizes = [8, 64], strides = [1, 1]} : vector<8x192xf32> to vector<8x64xf32>
      %198 = arith.addf %196, %197 : vector<8x64xf32>
      %199 = arith.negf %198 : vector<8x64xf32>
      %200 = math.exp %199 : vector<8x64xf32>
      %cst_79 = arith.constant 1.000000e+00 : f32
      %201 = vector.broadcast %cst_79 : f32 to vector<8x64xf32>
      %202 = arith.addf %201, %200 : vector<8x64xf32>
      %203 = arith.divf %201, %202 : vector<8x64xf32>
      %204 = vector.extract_strided_slice %190 {offsets = [0, 64], sizes = [8, 64], strides = [1, 1]} : vector<8x192xf32> to vector<8x64xf32>
      %205 = vector.extract_strided_slice %195 {offsets = [0, 64], sizes = [8, 64], strides = [1, 1]} : vector<8x192xf32> to vector<8x64xf32>
      %206 = arith.addf %204, %205 : vector<8x64xf32>
      %207 = arith.negf %206 : vector<8x64xf32>
      %208 = math.exp %207 : vector<8x64xf32>
      %cst_80 = arith.constant 1.000000e+00 : f32
      %209 = vector.broadcast %cst_80 : f32 to vector<8x64xf32>
      %210 = arith.addf %209, %208 : vector<8x64xf32>
      %211 = arith.divf %209, %210 : vector<8x64xf32>
      %212 = vector.extract_strided_slice %190 {offsets = [0, 128], sizes = [8, 64], strides = [1, 1]} : vector<8x192xf32> to vector<8x64xf32>
      %213 = vector.extract_strided_slice %195 {offsets = [0, 128], sizes = [8, 64], strides = [1, 1]} : vector<8x192xf32> to vector<8x64xf32>
      %214 = arith.mulf %203, %213 : vector<8x64xf32>
      %215 = arith.addf %212, %214 : vector<8x64xf32>
      %216 = math.tanh %215 : vector<8x64xf32>
      %cst_81 = arith.constant 1.000000e+00 : f32
      %217 = vector.broadcast %cst_81 : f32 to vector<8x64xf32>
      %218 = arith.subf %217, %211 : vector<8x64xf32>
      %219 = arith.mulf %218, %216 : vector<8x64xf32>
      %220 = arith.mulf %211, %186 : vector<8x64xf32>
      %221 = arith.addf %219, %220 : vector<8x64xf32>
      %c5 = arith.constant 5 : index
      %c0_82 = arith.constant 0 : index
      %c0_83 = arith.constant 0 : index
      %222 = vector.load %arg17[%c5, %c0_82, %c0_83] : memref<8x8x64xf32, #tpu.memory_space<vmem>>, vector<1x8x64xf32>
      %223 = vector.shape_cast %222 : vector<1x8x64xf32> to vector<8x64xf32>
      %224 = vector.shape_cast %221 : vector<8x64xf32> to vector<1x8x64xf32>
      tpu.vector_store %arg17[%c5, %c0_82, %c0_83], %224 {strides = array<i32>} : memref<8x8x64xf32, #tpu.memory_space<vmem>>, vector<1x8x64xf32>,
      %c48 = arith.constant 48 : index
      %c0_84 = arith.constant 0 : index
      %225 = vector.load %arg16[%c48, %c0_84] : memref<64x192xf32, #tpu.memory_space<vmem>>, vector<8x192xf32>
      %c0_85 = arith.constant 0 : index
      %c0_86 = arith.constant 0 : index
      %226 = vector.load %arg6[%c0_85, %c0_86] : memref<64x192xf32, #tpu.memory_space<vmem>>, vector<64x192xf32>
      %cst_87 = arith.constant dense<0.000000e+00> : vector<8x192xf32>
      %227 = tpu.matmul %221, %226, %cst_87 {dimension_numbers = #tpu.dot_dimension_numbers<[1], [0], [0], [1], [0, 0, 1, 1], [], []>} : vector<8x64xf32>, vector<64x192xf32>, vector<8x192xf32> -> vector<8x192xf32>
      %c0_88 = arith.constant 0 : index
      %c0_89 = arith.constant 0 : index
      %228 = vector.load %arg8[%c0_88, %c0_89] : memref<1x192xf32, #tpu.memory_space<vmem>>, vector<1x192xf32>
      %229 = vector.broadcast %228 : vector<1x192xf32> to vector<8x192xf32>
      %230 = arith.addf %227, %229 : vector<8x192xf32>
      %231 = vector.extract_strided_slice %225 {offsets = [0, 0], sizes = [8, 64], strides = [1, 1]} : vector<8x192xf32> to vector<8x64xf32>
      %232 = vector.extract_strided_slice %230 {offsets = [0, 0], sizes = [8, 64], strides = [1, 1]} : vector<8x192xf32> to vector<8x64xf32>
      %233 = arith.addf %231, %232 : vector<8x64xf32>
      %234 = arith.negf %233 : vector<8x64xf32>
      %235 = math.exp %234 : vector<8x64xf32>
      %cst_90 = arith.constant 1.000000e+00 : f32
      %236 = vector.broadcast %cst_90 : f32 to vector<8x64xf32>
      %237 = arith.addf %236, %235 : vector<8x64xf32>
      %238 = arith.divf %236, %237 : vector<8x64xf32>
      %239 = vector.extract_strided_slice %225 {offsets = [0, 64], sizes = [8, 64], strides = [1, 1]} : vector<8x192xf32> to vector<8x64xf32>
      %240 = vector.extract_strided_slice %230 {offsets = [0, 64], sizes = [8, 64], strides = [1, 1]} : vector<8x192xf32> to vector<8x64xf32>
      %241 = arith.addf %239, %240 : vector<8x64xf32>
      %242 = arith.negf %241 : vector<8x64xf32>
      %243 = math.exp %242 : vector<8x64xf32>
      %cst_91 = arith.constant 1.000000e+00 : f32
      %244 = vector.broadcast %cst_91 : f32 to vector<8x64xf32>
      %245 = arith.addf %244, %243 : vector<8x64xf32>
      %246 = arith.divf %244, %245 : vector<8x64xf32>
      %247 = vector.extract_strided_slice %225 {offsets = [0, 128], sizes = [8, 64], strides = [1, 1]} : vector<8x192xf32> to vector<8x64xf32>
      %248 = vector.extract_strided_slice %230 {offsets = [0, 128], sizes = [8, 64], strides = [1, 1]} : vector<8x192xf32> to vector<8x64xf32>
      %249 = arith.mulf %238, %248 : vector<8x64xf32>
      %250 = arith.addf %247, %249 : vector<8x64xf32>
      %251 = math.tanh %250 : vector<8x64xf32>
      %cst_92 = arith.constant 1.000000e+00 : f32
      %252 = vector.broadcast %cst_92 : f32 to vector<8x64xf32>
      %253 = arith.subf %252, %246 : vector<8x64xf32>
      %254 = arith.mulf %253, %251 : vector<8x64xf32>
      %255 = arith.mulf %246, %221 : vector<8x64xf32>
      %256 = arith.addf %254, %255 : vector<8x64xf32>
      %c6 = arith.constant 6 : index
      %c0_93 = arith.constant 0 : index
      %c0_94 = arith.constant 0 : index
      %257 = vector.load %arg17[%c6, %c0_93, %c0_94] : memref<8x8x64xf32, #tpu.memory_space<vmem>>, vector<1x8x64xf32>
      %258 = vector.shape_cast %257 : vector<1x8x64xf32> to vector<8x64xf32>
      %259 = vector.shape_cast %256 : vector<8x64xf32> to vector<1x8x64xf32>
      tpu.vector_store %arg17[%c6, %c0_93, %c0_94], %259 {strides = array<i32>} : memref<8x8x64xf32, #tpu.memory_space<vmem>>, vector<1x8x64xf32>,
      %c56 = arith.constant 56 : index
      %c0_95 = arith.constant 0 : index
      %260 = vector.load %arg16[%c56, %c0_95] : memref<64x192xf32, #tpu.memory_space<vmem>>, vector<8x192xf32>
      %c0_96 = arith.constant 0 : index
      %c0_97 = arith.constant 0 : index
      %261 = vector.load %arg6[%c0_96, %c0_97] : memref<64x192xf32, #tpu.memory_space<vmem>>, vector<64x192xf32>
      %cst_98 = arith.constant dense<0.000000e+00> : vector<8x192xf32>
      %262 = tpu.matmul %256, %261, %cst_98 {dimension_numbers = #tpu.dot_dimension_numbers<[1], [0], [0], [1], [0, 0, 1, 1], [], []>} : vector<8x64xf32>, vector<64x192xf32>, vector<8x192xf32> -> vector<8x192xf32>
      %c0_99 = arith.constant 0 : index
      %c0_100 = arith.constant 0 : index
      %263 = vector.load %arg8[%c0_99, %c0_100] : memref<1x192xf32, #tpu.memory_space<vmem>>, vector<1x192xf32>
      %264 = vector.broadcast %263 : vector<1x192xf32> to vector<8x192xf32>
      %265 = arith.addf %262, %264 : vector<8x192xf32>
      %266 = vector.extract_strided_slice %260 {offsets = [0, 0], sizes = [8, 64], strides = [1, 1]} : vector<8x192xf32> to vector<8x64xf32>
      %267 = vector.extract_strided_slice %265 {offsets = [0, 0], sizes = [8, 64], strides = [1, 1]} : vector<8x192xf32> to vector<8x64xf32>
      %268 = arith.addf %266, %267 : vector<8x64xf32>
      %269 = arith.negf %268 : vector<8x64xf32>
      %270 = math.exp %269 : vector<8x64xf32>
      %cst_101 = arith.constant 1.000000e+00 : f32
      %271 = vector.broadcast %cst_101 : f32 to vector<8x64xf32>
      %272 = arith.addf %271, %270 : vector<8x64xf32>
      %273 = arith.divf %271, %272 : vector<8x64xf32>
      %274 = vector.extract_strided_slice %260 {offsets = [0, 64], sizes = [8, 64], strides = [1, 1]} : vector<8x192xf32> to vector<8x64xf32>
      %275 = vector.extract_strided_slice %265 {offsets = [0, 64], sizes = [8, 64], strides = [1, 1]} : vector<8x192xf32> to vector<8x64xf32>
      %276 = arith.addf %274, %275 : vector<8x64xf32>
      %277 = arith.negf %276 : vector<8x64xf32>
      %278 = math.exp %277 : vector<8x64xf32>
      %cst_102 = arith.constant 1.000000e+00 : f32
      %279 = vector.broadcast %cst_102 : f32 to vector<8x64xf32>
      %280 = arith.addf %279, %278 : vector<8x64xf32>
      %281 = arith.divf %279, %280 : vector<8x64xf32>
      %282 = vector.extract_strided_slice %260 {offsets = [0, 128], sizes = [8, 64], strides = [1, 1]} : vector<8x192xf32> to vector<8x64xf32>
      %283 = vector.extract_strided_slice %265 {offsets = [0, 128], sizes = [8, 64], strides = [1, 1]} : vector<8x192xf32> to vector<8x64xf32>
      %284 = arith.mulf %273, %283 : vector<8x64xf32>
      %285 = arith.addf %282, %284 : vector<8x64xf32>
      %286 = math.tanh %285 : vector<8x64xf32>
      %cst_103 = arith.constant 1.000000e+00 : f32
      %287 = vector.broadcast %cst_103 : f32 to vector<8x64xf32>
      %288 = arith.subf %287, %281 : vector<8x64xf32>
      %289 = arith.mulf %288, %286 : vector<8x64xf32>
      %290 = arith.mulf %281, %256 : vector<8x64xf32>
      %291 = arith.addf %289, %290 : vector<8x64xf32>
      %c7 = arith.constant 7 : index
      %c0_104 = arith.constant 0 : index
      %c0_105 = arith.constant 0 : index
      %292 = vector.load %arg17[%c7, %c0_104, %c0_105] : memref<8x8x64xf32, #tpu.memory_space<vmem>>, vector<1x8x64xf32>
      %293 = vector.shape_cast %292 : vector<1x8x64xf32> to vector<8x64xf32>
      %294 = vector.shape_cast %291 : vector<8x64xf32> to vector<1x8x64xf32>
      tpu.vector_store %arg17[%c7, %c0_104, %c0_105], %294 {strides = array<i32>} : memref<8x8x64xf32, #tpu.memory_space<vmem>>, vector<1x8x64xf32>,
      %c0_106 = arith.constant 0 : index
      %c0_107 = arith.constant 0 : index
      %295 = vector.load %arg2[%c0_106, %c0_107] : memref<8x8xf32, #tpu.memory_space<vmem>>, vector<8x8xf32>
      %c0_108 = arith.constant 0 : index
      %c0_109 = arith.constant 0 : index
      %c0_110 = arith.constant 0 : index
      %296 = vector.load %arg17[%c0_108, %c0_109, %c0_110] : memref<8x8x64xf32, #tpu.memory_space<vmem>>, vector<8x8x64xf32>
      %297 = vector.shape_cast %295 : vector<8x8xf32> to vector<8x8x1xf32>
      %298 = vector.broadcast %297 : vector<8x8x1xf32> to vector<8x8x64xf32>
      %299 = arith.mulf %296, %298 : vector<8x8x64xf32>
      %c0_111 = arith.constant 0 : index
      %c0_112 = arith.constant 0 : index
      %300 = vector.load %arg3[%c0_111, %c0_112] : memref<8x8xf32, #tpu.memory_space<vmem>>, vector<8x8xf32>
      %301 = vector.shape_cast %300 : vector<8x8xf32> to vector<8x8x1xf32>
      %302 = vector.broadcast %301 : vector<8x8x1xf32> to vector<8x8x64xf32>
      %303 = arith.mulf %302, %299 : vector<8x8x64xf32>
      %cst_113 = arith.constant dense<0.000000e+00> : vector<8x64xf32>
      %304 = vector.multi_reduction <add>, %303, %cst_113 [0] : vector<8x8x64xf32> to vector<8x64xf32>
      %305 = vector.shape_cast %299 : vector<8x8x64xf32> to vector<64x64xf32>
      %c0_114 = arith.constant 0 : index
      %c0_115 = arith.constant 0 : index
      %306 = vector.load %arg10[%c0_114, %c0_115] : memref<64x64xf32, #tpu.memory_space<vmem>>, vector<64x64xf32>
      %cst_116 = arith.constant dense<0.000000e+00> : vector<64x64xf32>
      %307 = tpu.matmul %305, %306, %cst_116 {dimension_numbers = #tpu.dot_dimension_numbers<[1], [0], [0], [1], [0, 0, 1, 1], [], []>} : vector<64x64xf32>, vector<64x64xf32>, vector<64x64xf32> -> vector<64x64xf32>
      %308 = vector.shape_cast %307 : vector<64x64xf32> to vector<8x8x64xf32>
      %c0_117 = arith.constant 0 : index
      %c0_118 = arith.constant 0 : index
      %309 = vector.load %arg9[%c0_117, %c0_118] : memref<64x64xf32, #tpu.memory_space<vmem>>, vector<64x64xf32>
      %cst_119 = arith.constant dense<0.000000e+00> : vector<8x64xf32>
      %310 = tpu.matmul %304, %309, %cst_119 {dimension_numbers = #tpu.dot_dimension_numbers<[1], [0], [0], [1], [0, 0, 1, 1], [], []>} : vector<8x64xf32>, vector<64x64xf32>, vector<8x64xf32> -> vector<8x64xf32>
      %c0_120 = arith.constant 0 : index
      %c0_121 = arith.constant 0 : index
      %311 = vector.load %arg4[%c0_120, %c0_121] : memref<8x8xf32, #tpu.memory_space<vmem>>, vector<8x8xf32>
      %312 = vector.shape_cast %311 : vector<8x8xf32> to vector<8x8x1xf32>
      %313 = vector.shape_cast %310 : vector<8x64xf32> to vector<1x8x64xf32>
      %314 = vector.broadcast %312 : vector<8x8x1xf32> to vector<8x8x64xf32>
      %315 = vector.broadcast %313 : vector<1x8x64xf32> to vector<8x8x64xf32>
      %316 = arith.mulf %314, %315 : vector<8x8x64xf32>
      %317 = arith.addf %316, %308 : vector<8x8x64xf32>
      %cst_122 = arith.constant 6.000000e+00 : f32
      %318 = vector.broadcast %cst_122 : f32 to vector<8x8x64xf32>
      %319 = arith.divf %317, %318 : vector<8x8x64xf32>
      %cst_123 = arith.constant 5.000000e-01 : f32
      %320 = vector.broadcast %cst_123 : f32 to vector<8x8x64xf32>
      %321 = arith.addf %319, %320 : vector<8x8x64xf32>
      %cst_124 = arith.constant 0.000000e+00 : f32
      %cst_125 = arith.constant 1.000000e+00 : f32
      %322 = vector.broadcast %cst_124 : f32 to vector<8x8x64xf32>
      %323 = arith.maximumf %322, %321 : vector<8x8x64xf32>
      %324 = vector.broadcast %cst_125 : f32 to vector<8x8x64xf32>
      %325 = arith.minimumf %324, %323 : vector<8x8x64xf32>
      %c0_126 = arith.constant 0 : index
      %c0_127 = arith.constant 0 : index
      %326 = vector.load %arg11[%c0_126, %c0_127] : memref<1x64xf32, #tpu.memory_space<vmem>>, vector<1x64xf32>
      %327 = vector.shape_cast %326 : vector<1x64xf32> to vector<1x1x64xf32>
      %328 = vector.broadcast %327 : vector<1x1x64xf32> to vector<8x8x64xf32>
      %329 = arith.mulf %325, %328 : vector<8x8x64xf32>
      %cst_128 = arith.constant dense<0.000000e+00> : vector<8x8xf32>
      %330 = vector.multi_reduction <add>, %329, %cst_128 [2] : vector<8x8x64xf32> to vector<8x8xf32>
      %cst_129 = arith.constant 0.000000e+00 : f32
      %331 = vector.broadcast %cst_129 : f32 to vector<8x8xf32>
      %332 = arith.cmpf oeq, %311, %331 : vector<8x8xf32>
      %cst_130 = arith.constant -1.000000e+09 : f32
      %333 = vector.broadcast %cst_130 : f32 to vector<8x8xf32>
      %334 = arith.select %332, %333, %330 : vector<8x8xi1>, vector<8x8xf32>
      %cst_131 = arith.constant dense<0xFF800000> : vector<8xf32>
      %335 = vector.multi_reduction <maximumf>, %334, %cst_131 [0] : vector<8x8xf32> to vector<8xf32>
      %336 = vector.shape_cast %335 : vector<8xf32> to vector<1x8xf32>
      %337 = vector.broadcast %336 : vector<1x8xf32> to vector<8x8xf32>
      %338 = arith.subf %334, %337 : vector<8x8xf32>
      %339 = math.exp %338 : vector<8x8xf32>
      %cst_132 = arith.constant dense<0.000000e+00> : vector<8xf32>
      %340 = vector.multi_reduction <add>, %339, %cst_132 [0] : vector<8x8xf32> to vector<8xf32>
      %341 = vector.shape_cast %340 : vector<8xf32> to vector<1x8xf32>
      %342 = tpu.reciprocal %341 {approx = true} : vector<1x8xf32> -> vector<1x8xf32>
      %343 = vector.broadcast %342 : vector<1x8xf32> to vector<8x8xf32>
      %344 = arith.mulf %339, %343 : vector<8x8xf32>
      %345 = vector.shape_cast %344 : vector<8x8xf32> to vector<8x8x1xf32>
      %346 = vector.broadcast %345 : vector<8x8x1xf32> to vector<8x8x64xf32>
      %347 = arith.mulf %346, %299 : vector<8x8x64xf32>
      %cst_133 = arith.constant dense<0.000000e+00> : vector<8x64xf32>
      %348 = vector.multi_reduction <add>, %347, %cst_133 [0] : vector<8x8x64xf32> to vector<8x64xf32>
      %c0_134 = arith.constant 0 : index
      %c0_135 = arith.constant 0 : index
      %349 = vector.load %arg12[%c0_134, %c0_135] : memref<64x32xf32, #tpu.memory_space<vmem>>, vector<64x32xf32>
      %cst_136 = arith.constant dense<0.000000e+00> : vector<8x32xf32>
      %350 = tpu.matmul %304, %349, %cst_136 {dimension_numbers = #tpu.dot_dimension_numbers<[1], [0], [0], [1], [0, 0, 1, 1], [], []>} : vector<8x64xf32>, vector<64x32xf32>, vector<8x32xf32> -> vector<8x32xf32>
      %c0_137 = arith.constant 0 : index
      %c0_138 = arith.constant 0 : index
      %351 = vector.load %arg13[%c0_137, %c0_138] : memref<64x32xf32, #tpu.memory_space<vmem>>, vector<64x32xf32>
      %cst_139 = arith.constant dense<0.000000e+00> : vector<8x32xf32>
      %352 = tpu.matmul %348, %351, %cst_139 {dimension_numbers = #tpu.dot_dimension_numbers<[1], [0], [0], [1], [0, 0, 1, 1], [], []>} : vector<8x64xf32>, vector<64x32xf32>, vector<8x32xf32> -> vector<8x32xf32>
      %353 = arith.addf %350, %352 : vector<8x32xf32>
      %354 = arith.truncf %353 : vector<8x32xf32> to vector<8x32xbf16>
      %c0_140 = arith.constant 0 : index
      %c0_141 = arith.constant 0 : index
      %355 = vector.load %arg18[%c0_140, %c0_141] : memref<8x32xbf16, #tpu.memory_space<vmem>>, vector<8x32xbf16>
      tpu.vector_store %arg18[%c0_140, %c0_141], %354 {strides = array<i32>} : memref<8x32xbf16, #tpu.memory_space<vmem>>, vector<8x32xbf16>,
    } else {
    }
    %c0 = arith.constant 0 : index
    %c0_1 = arith.constant 0 : index
    %3 = vector.load %arg18[%c0, %c0_1] : memref<8x32xbf16, #tpu.memory_space<vmem>>, vector<8x32xbf16>
    %c0_2 = arith.constant 0 : index
    %c0_3 = arith.constant 0 : index
    %4 = vector.load %arg14[%c0_2, %c0_3] : memref<32x128xbf16, #tpu.memory_space<vmem>>, vector<32x128xbf16>
    %cst = arith.constant dense<0.000000e+00> : vector<8x128xf32>
    %5 = tpu.matmul %3, %4, %cst {dimension_numbers = #tpu.dot_dimension_numbers<[1], [0], [0], [1], [0, 0, 1, 1], [], []>} : vector<8x32xbf16>, vector<32x128xbf16>, vector<8x128xf32> -> vector<8x128xf32>
    %c0_4 = arith.constant 0 : index
    %c0_5 = arith.constant 0 : index
    %6 = vector.load %arg15[%c0_4, %c0_5] : memref<8x128xf32, #tpu.memory_space<vmem>>, vector<8x128xf32>
    tpu.vector_store %arg15[%c0_4, %c0_5], %5 {strides = array<i32>} : memref<8x128xf32, #tpu.memory_space<vmem>>, vector<8x128xf32>,
    return
  }
  func.func @transform_0(%arg0: i32) -> (i32, i32) {
    %c0_i32 = arith.constant 0 : i32
    %c0_i32_0 = arith.constant 0 : i32
    %c0_i32_1 = arith.constant 0 : i32
    return %c0_i32, %c0_i32_0 : i32, i32
  }
  func.func @transform_1(%arg0: i32) -> (i32, i32) {
    %c0_i32 = arith.constant 0 : i32
    %c0_i32_0 = arith.constant 0 : i32
    %c0_i32_1 = arith.constant 0 : i32
    return %c0_i32, %c0_i32_0 : i32, i32
  }
  func.func @transform_2(%arg0: i32) -> (i32, i32) {
    %c0_i32 = arith.constant 0 : i32
    %c0_i32_0 = arith.constant 0 : i32
    %c0_i32_1 = arith.constant 0 : i32
    return %c0_i32, %c0_i32_0 : i32, i32
  }
  func.func @transform_3(%arg0: i32) -> (i32, i32) {
    %c0_i32 = arith.constant 0 : i32
    %c0_i32_0 = arith.constant 0 : i32
    %c0_i32_1 = arith.constant 0 : i32
    return %c0_i32, %c0_i32_0 : i32, i32
  }
  func.func @transform_4(%arg0: i32) -> (i32, i32) {
    %c0_i32 = arith.constant 0 : i32
    %c0_i32_0 = arith.constant 0 : i32
    %c0_i32_1 = arith.constant 0 : i32
    return %c0_i32, %c0_i32_0 : i32, i32
  }
  func.func @transform_5(%arg0: i32) -> (i32, i32) {
    %c0_i32 = arith.constant 0 : i32
    %c0_i32_0 = arith.constant 0 : i32
    %c0_i32_1 = arith.constant 0 : i32
    return %c0_i32, %c0_i32_0 : i32, i32
  }
  func.func @transform_6(%arg0: i32) -> (i32, i32) {
    %c0_i32 = arith.constant 0 : i32
    %c0_i32_0 = arith.constant 0 : i32
    %c0_i32_1 = arith.constant 0 : i32
    return %c0_i32, %c0_i32_0 : i32, i32
  }
  func.func @transform_7(%arg0: i32) -> (i32, i32) {
    %c0_i32 = arith.constant 0 : i32
    %c0_i32_0 = arith.constant 0 : i32
    %c0_i32_1 = arith.constant 0 : i32
    return %c0_i32, %c0_i32_0 : i32, i32
  }
  func.func @transform_8(%arg0: i32) -> (i32, i32) {
    %c0_i32 = arith.constant 0 : i32
    %c0_i32_0 = arith.constant 0 : i32
    %c0_i32_1 = arith.constant 0 : i32
    return %c0_i32, %c0_i32_0 : i32, i32
  }
  func.func @transform_9(%arg0: i32) -> (i32, i32) {
    %c0_i32 = arith.constant 0 : i32
    %c0_i32_0 = arith.constant 0 : i32
    %c0_i32_1 = arith.constant 0 : i32
    return %c0_i32, %c0_i32_0 : i32, i32
  }
  func.func @transform_10(%arg0: i32) -> (i32, i32) {
    %c0_i32 = arith.constant 0 : i32
    %c0_i32_0 = arith.constant 0 : i32
    %c0_i32_1 = arith.constant 0 : i32
    return %c0_i32, %c0_i32_0 : i32, i32
  }
  func.func @transform_11(%arg0: i32) -> (i32, i32) {
    %c0_i32 = arith.constant 0 : i32
    %c0_i32_0 = arith.constant 0 : i32
    %c0_i32_1 = arith.constant 0 : i32
    return %c0_i32, %c0_i32_0 : i32, i32
  }
  func.func @transform_12(%arg0: i32) -> (i32, i32) {
    %c0_i32 = arith.constant 0 : i32
    %c0_i32_0 = arith.constant 0 : i32
    %c0_i32_1 = arith.constant 0 : i32
    return %c0_i32, %c0_i32_0 : i32, i32
  }
  func.func @transform_13(%arg0: i32) -> (i32, i32) {
    %c0_i32 = arith.constant 0 : i32
    %c0_i32_0 = arith.constant 0 : i32
    return %c0_i32, %arg0 : i32, i32
  }
  func.func @transform_14(%arg0: i32) -> (i32, i32) {
    %c0_i32 = arith.constant 0 : i32
    %c0_i32_0 = arith.constant 0 : i32
    return %c0_i32, %arg0 : i32, i32
  }
}

</mosaic_0001>

<bundles_post_ra>
// kernel: tpu_custom_call.1
= control target key start
LH: loop header
LB: loop body
LE: loop exit
PB: predicated region body
PF: predicated region fallthrough
CT: control target
= control target key end

     0   :  { %19 = vsyncpa [#allocation6], 0  ;;  %s3447_s0 = inlined_call_operand.vmem [shape: f32[64,32], index: 0, kind: input, shape index: {}]   ;;  %s3448_s1 = inlined_call_operand.hbm [shape: f32[8,8], index: 1, kind: input, shape index: {}]   ;;  %s3449_s2 = inlined_call_operand.hbm [shape: f32[8,8], index: 2, kind: input, shape index: {}]   ;;  %s3450_s3 = inlined_call_operand.hbm [shape: f32[8,8], index: 3, kind: input, shape index: {}]   ;;  %s3451_s4 = inlined_call_operand.vmem [shape: f32[32,192], index: 4, kind: input, shape index: {}]   ;;  %s3452_s5 = inlined_call_operand.vmem [shape: f32[64,192], index: 5, kind: input, shape index: {}]   ;;  %s3453_s6 = inlined_call_operand.vmem [shape: f32[1,192], index: 6, kind: input, shape index: {}]   ;;  %s3454_s7 = inlined_call_operand.hbm [shape: f32[1,192], index: 7, kind: input, shape index: {}]   ;;  %s3455_s8 = inlined_call_operand.vmem [shape: f32[64,64], index: 8, kind: input, shape index: {}]   ;;  %s3456_s9 = inlined_call_operand.hbm [shape: f32[64,64], index: 9, kind: input, shape index: {}]   ;;  %s3457_s10 = inlined_call_operand.hbm [shape: f32[1,64], index: 10, kind: input, shape index: {}]   ;;  %s3458_s11 = inlined_call_operand.vmem [shape: f32[64,32], index: 11, kind: input, shape index: {}]   ;;  %s3459_s12 = inlined_call_operand.vmem [shape: f32[64,32], index: 12, kind: input, shape index: {}]   ;;  %s3460_s13 = inlined_call_operand.vmem [shape: bf16[32,128], index: 13, kind: input, shape index: {}]   ;;  %s3461_s14 = inlined_call_operand.hbm [shape: f32[8,128], index: 14, kind: output, shape index: {}]  }
   0x1   :  { %20 = vsyncpa [#allocation9], 0 }
   0x2   :  { %21 = vsyncpa [#allocation12], 0 }
   0x3   :  { %22 = vsyncpa [#allocation15], 0 }
   0x4   :  { %23 = vsyncpa [#allocation7], 0  ;;  %s2633_s29 = smov [#allocation8]   ;;  %s2634_s15 = smov [#allocation11]  }
   0x5   :  { %s42_s30 = sshll.u32 %s2633_s29, 4  ;;  %s68_s16 = sshll.u32 %s2634_s15, 4  ;;  %s43_s30 = int_to_ptr.vmem [resolvable:$true] %s42_s30  ;;  %s69_s16 = int_to_ptr.vmem [resolvable:$true] %s68_s16 }
   0x6   :  { %s2491_s17 = scalar_lea.vmem %s43_s30, 128  ;;  %p2496_p1 = scmp.lt.s32.totalorder %s43_s30, %s43_s30 }
   0x7   :  { %p2492_p0 = scmp.ne.s32.totalorder %s43_s30, %s2491_s17  ;;  %p2497_p2 = scmp.lt.s32.totalorder %s2491_s17, %s2491_s17 }
   0x9   :  { %p2498_p3 = por %p2497_p2, %p2496_p1 }
   0xb   :  { %p2499_p4 = pnand %p2498_p3, %p2492_p0 }
   0xd   :  { %2502 = shalt.err (!%p2499_p4)
}
   0xe   :  { %45 = dma.hbm_to_vmem [thread:$0]  %s3449_s2, 128, %s43_s30, [#allocation9]  }
   0xf   :  { %s2511_s20 = scalar_lea.vmem %s69_s16, 32  ;;  %p2516_p6 = scmp.lt.s32.totalorder %s69_s16, %s69_s16 }
  0x10   :  { %p2512_p5 = scmp.ne.s32.totalorder %s69_s16, %s2511_s20  ;;  %p2517_p7 = scmp.lt.s32.totalorder %s2511_s20, %s2511_s20 }
  0x12   :  { %p2518_p8 = por %p2517_p7, %p2516_p6 }
  0x14   :  { %p2519_p9 = pnand %p2518_p8, %p2512_p5 }
  0x16   :  { %2522 = shalt.err (!%p2519_p9)
}
  0x17   :  { %71 = dma.hbm_to_vmem [thread:$0]  %s3454_s7, 32, %s69_s16, [#allocation12]  }
  0x18   :  { %s2635_s23 = smov [#allocation5]   ;;  %s2636_s25 = smov [#allocation10]  }
  0x19   :  { %s32_s24 = sshll.u32 %s2635_s23, 4  ;;  %s52_s26 = sshll.u32 %s2636_s25, 4  ;;  %s33_s24 = int_to_ptr.vmem [resolvable:$true] %s32_s24  ;;  %s53_s26 = int_to_ptr.vmem [resolvable:$true] %s52_s26 }
  0x1a   :  { %s2531_s27 = scalar_lea.vmem %s33_s24, 128  ;;  %p2536_p11 = scmp.lt.s32.totalorder %s33_s24, %s33_s24 }
  0x1b   :  { %p2532_p10 = scmp.ne.s32.totalorder %s33_s24, %s2531_s27  ;;  %p2537_p12 = scmp.lt.s32.totalorder %s2531_s27, %s2531_s27 }
  0x1d   :  { %p2538_p13 = por %p2537_p12, %p2536_p11 }
  0x1f   :  { %p2539_p0 = pnand %p2538_p13, %p2532_p10 }
  0x21   :  { %2542 = shalt.err (!%p2539_p0)
}
  0x22   :  { %35 = dma.hbm_to_vmem [thread:$0]  %s3448_s1, 128, %s33_s24, [#allocation6]  }
  0x23   :  { %s2551_s29 = scalar_lea.vmem %s53_s26, 128  ;;  %p2556_p2 = scmp.lt.s32.totalorder %s53_s26, %s53_s26 }
  0x24   :  { %p2552_p1 = scmp.ne.s32.totalorder %s53_s26, %s2551_s29  ;;  %p2557_p3 = scmp.lt.s32.totalorder %s2551_s29, %s2551_s29 }
  0x26   :  { %p2558_p4 = por %p2557_p3, %p2556_p2 }
  0x28   :  { %p2559_p5 = pnand %p2558_p4, %p2552_p1 }
  0x2a   :  { %2562 = shalt.err (!%p2559_p5)
}
  0x2b   :  { %55 = dma.hbm_to_vmem [thread:$0]  %s3450_s3, 128, %s53_s26, [#allocation9]  }
  0x2c   :  { %s2637_s15 = smov [#allocation13]  }
  0x2d   :  { %s79_s16 = sshll.u32 %s2637_s15, 4  ;;  %s80_s16 = int_to_ptr.vmem [resolvable:$true] %s79_s16 }
  0x2e   :  { %s2571_s17 = scalar_lea.vmem %s80_s16, 1024  ;;  %p2576_p7 = scmp.lt.s32.totalorder %s80_s16, %s80_s16 }
  0x2f   :  { %p2572_p6 = scmp.ne.s32.totalorder %s80_s16, %s2571_s17  ;;  %p2577_p8 = scmp.lt.s32.totalorder %s2571_s17, %s2571_s17 }
  0x31   :  { %p2578_p9 = por %p2577_p8, %p2576_p7 }
  0x33   :  { %p2579_p10 = pnand %p2578_p9, %p2572_p6 }
  0x35   :  { %2582 = shalt.err (!%p2579_p10)
}
  0x36   :  { %s2638_s1 = smov 128   ;;  %s2639_s18 = smov 8  }
  0x37   :  { %85 = dma.hbm_to_vmem [thread:$0]  %s3456_s9, 1024, %s80_s16, [#allocation12], %s2638_s1, %s2638_s1, %s2639_s18  }
  0x38   :  { %s2640_s21 = smov [#allocation14]  }
  0x39   :  { %s92_s22 = sshll.u32 %s2640_s21, 4  ;;  %s93_s22 = int_to_ptr.vmem [resolvable:$true] %s92_s22 }
  0x3a   :  { %s2591_s3 = scalar_lea.vmem %s93_s22, 16  ;;  %s2595_s23 = scalar_lea.vmem %s93_s22, 32 }
  0x3b   :  { %p2592_p11 = scmp.ne.s32.totalorder %s93_s22, %s2591_s3  ;;  %p2596_p12 = scmp.lt.s32.totalorder %s93_s22, %s93_s22 }
  0x3c   :  { %p2597_p13 = scmp.lt.s32.totalorder %s2595_s23, %s2591_s3 }
  0x3e   :  { %p2598_p0 = por %p2597_p13, %p2596_p12 }
  0x40   :  { %p2599_p1 = pnand %p2598_p0, %p2592_p11 }
  0x42   :  { %2602 = shalt.err (!%p2599_p1)
}
  0x43   :  { %95 = dma.hbm_to_vmem [thread:$0]  %s3457_s10, 16, %s93_s22, [#allocation15]  }
  0x44   :  { %2623 = dma.done.wait [#allocation6], 128  }
  0x45   :  { %2624 = vsyncadd [#allocation6], 4294967168 }
  0x46   :  { %2625 = dma.done.wait [#allocation9], 256  }
  0x47   :  { %2626 = vsyncadd [#allocation9], 4294967040 }
  0x48   :  { %2627 = dma.done.wait [#allocation12], 1056  }
  0x49   :  { %2628 = vsyncadd [#allocation12], 4294966240 }
  0x4a   :  { %2629 = dma.done.wait [#allocation15], 16  }
  0x4b   :  { %2630 = vsyncadd [#allocation15], 4294967280  ;;  %v2641_v0 = vmov 0.0   ;;  %v140_v1 = vld [vmem:[%s3451_s4 + $0x38] sm:$0xff]  ;;  %v139_v3 = vld [vmem:[%s3451_s4 + $0x30] sm:$0xff]  ;;  %vm153_vm0 = vcmask 261120   ;;  %v143_v26 = vlaneseq }
  0x4c   :  { %242 = vmatprep.mubr.f32.mxu0 %v2641_v0  ;;  %405 = vmatprep.mubr.f32.mxu1 %v2641_v0  ;;  %v2746_v2 = vld [vmem:[%s3452_s5 + $0x78] sm:$0xff]  ;;  %v2755_v4 = vld [vmem:[%s3452_s5 + $0x70] sm:$0xff]  ;;  %v138_v5 = vld [vmem:[%s3451_s4 + $0x28] sm:$0xff]  ;;  %vm292_vm1 = vcmask 523264   ;;  %s2642_s30 = smov 64   ;;  %vm2643_vm2 = vmmov 0  }
  0x4d   :  { %202 = vmatprep.subr.mxu0 %v140_v1  ;;  %357 = vmatprep.subr.mxu1 %v2746_v2  ;;  %v2763_v6 = vld [vmem:[%s3452_s5 + $0x68] sm:$0xff]  ;;  %v137_v7 = vld [vmem:[%s3451_s4 + $0x20] sm:$0xff]  ;;  %v136_v9 = vld [vmem:[%s3451_s4 + $0x18] sm:$0xff]  ;;  %v2902_v27 = vshrl.u32 %v143_v26, 7  ;;  %vm1883_vm3 = vcmask 1041409   ;;  %vm1885_vm4 = vcmask 1042434  }
  0x4e   :  { %203 = vmatpush1.msra.mxu0 %v139_v3  ;;  %358 = vmatpush1.msra.mxu1 %v2755_v4  ;;  %v2772_v8 = vld [vmem:[%s3452_s5 + $0x60] sm:$0xff]  ;;  %v2781_v10 = vld [vmem:[%s3452_s5 + $0x58] sm:$0xff]  ;;  %v135_v11 = vld [vmem:[%s3451_s4 + $0x10] sm:$0xff]  ;;  %vm1887_vm5 = vcmask 1043459   ;;  %vm1889_vm6 = vcmask 1044484   ;;  %vm1891_vm7 = vcmask 1045509  }
  0x4f   :  { %204 = vmatprep.subr.mxu0 %v138_v5  ;;  %359 = vmatprep.subr.mxu1 %v2763_v6  ;;  %v2789_v12 = vld [vmem:[%s3452_s5 + $0x50] sm:$0xff]  ;;  %v134_v13 = vld [vmem:[%s3451_s4 + $0x8] sm:$0xff]  ;;  %v133_v15 = vld [vmem:[%s3451_s4] sm:$0xff]  ;;  %v2905_v28 = vsub.s32 0, %v2902_v27  ;;  %v2911_v30 = vsub.s32 1, %v2902_v27  ;;  %vm1893_vm8 = vcmask 1046534  }
  0x50   :  { %205 = vmatpush1.msra.mxu0 %v137_v7  ;;  %360 = vmatpush1.msra.mxu1 %v2772_v8  ;;  %v2798_v14 = vld [vmem:[%s3452_s5 + $0x48] sm:$0xff]  ;;  %v2807_v16 = vld [vmem:[%s3452_s5 + $0x40] sm:$0xff]  ;;  %v2816_v18 = vld [vmem:[%s3452_s5 + $0x38] sm:$0xff]  ;;  %vm1895_vm9 = vcmask 1047559   ;;  %vm1899_vm11 = vcmask 64512   ;;  %vm2158_vm12 = vcmask 257024  }
  0x51   :  { %206 = vmatprep.subr.mxu0 %v136_v9  ;;  %361 = vmatprep.subr.mxu1 %v2781_v10  ;;  %v125_v17 = vld [vmem:[%s3447_s0] sm:$0xff]  ;;  %v2822_v19 = vld [vmem:[%s3452_s5 + $0x30] sm:$0xff]  ;;  %v2828_v20 = vld [vmem:[%s3452_s5 + $0x28] sm:$0xff]  ;;  %s2644_s26 = smov [#allocation16]  }
  0x52   :  { %207 = vmatpush1.msra.mxu0 %v135_v11  ;;  %362 = vmatpush1.msra.mxu1 %v2789_v12  ;;  %v2833_v21 = vld [vmem:[%s3452_s5 + $0x20] sm:$0xff]  ;;  %v2841_v22 = vld [vmem:[%s3452_s5 + $0x18] sm:$0xff]  ;;  %v2848_v23 = vld [vmem:[%s3452_s5 + $0x10] sm:$0xff]  ;;  %s2228_s27 = sshll.u32 %s2644_s26, 4  ;;  %s2229_s27 = int_to_ptr.vmem [resolvable:$true] %s2228_s27 }
  0x53   :  { %208 = vmatprep.subr.mxu0 %v134_v13  ;;  %363 = vmatprep.subr.mxu1 %v2798_v14  ;;  %v2855_v24 = vld [vmem:[%s3452_s5 + $0x8] sm:$0xff]  ;;  %v2862_v25 = vld [vmem:[%s3452_s5] sm:$0xff]  ;;  %v326_v36 = vld [vmem:[#allocation11] sm:$0x3]  ;;  %p2608_p3 = scmp.lt.s32.totalorder %s2229_s27, %s2229_s27 }
  0x54   :  { %209 = vmatpush1.msra.mxu0 %v133_v15  ;;  %364 = vmatpush1.msra.mxu1 %v2807_v16  ;;  %v141_v29 = vld [vmem:[%s3453_s6] sm:$0x3]  ;;  %v331_v38 = vrot.slane %v326_v36, %v2905_v28  ;;  %v335_v45 = vrot.slane %v326_v36, %v2911_v30  ;;  %v126_v52 = vld [vmem:[%s3447_s0 + $0x8] sm:$0xff]  ;;  %v453_v1 = vld [vmem:[#allocation11] sm:$0x3] }
  0x55   :  { %2240 = vmatmul.mubr.msk.f32.vlgmr.msra.gmra.mxu0 %vm153_vm0, %v125_v17  ;;  %365 = vmatprep.subr.mxu1 %v2816_v18  ;;  %v2914_v31 = vrot.slane %v141_v29, %v2905_v28  ;;  %v2917_v32 = vrot.slane %v141_v29, %v2911_v30  ;;  %v458_v3 = vrot.slane %v453_v1, %v2905_v28 }
  0x56   :  { %366 = vmatpush1.msra.mxu1 %v2822_v19  ;;  %248 = vmatprep.mubr.f32.mxu0 %v2641_v0  ;;  %v462_v17 = vrot.slane %v453_v1, %v2911_v30 }
  0x57   :  { %367 = vmatprep.subr.mxu1 %v2828_v20  ;;  %610 = vmatprep.subr.mxu0 %v2746_v2 }
  0x58   :  { %368 = vmatpush1.msra.mxu1 %v2833_v21  ;;  %611 = vmatpush1.msra.mxu0 %v2755_v4 }
  0x59   :  { %369 = vmatprep.subr.mxu1 %v2841_v22  ;;  %612 = vmatprep.subr.mxu0 %v2763_v6 }
  0x5a   :  { %370 = vmatpush1.msra.mxu1 %v2848_v23  ;;  %613 = vmatpush1.msra.mxu0 %v2772_v8 }
  0x5b   :  { %371 = vmatprep.subr.mxu1 %v2855_v24  ;;  %614 = vmatprep.subr.mxu0 %v2781_v10 }
  0x5c   :  { %372 = vmatpush1.msra.mxu1 %v2862_v25  ;;  %615 = vmatpush1.msra.mxu0 %v2789_v12 }
  0x5d   :  { %406 = vmatmul.mubr.f32.vlgmr.msra.gmra.mxu1 %v2641_v0  ;;  %483 = vmatprep.subr.mxu1 %v2746_v2 }
  0x5e   :  { %484 = vmatpush1.msra.mxu1 %v2755_v4  ;;  %531 = vmatprep.mubr.f32.mxu1 %v2641_v0 }
  0x5f   :  { %485 = vmatprep.subr.mxu1 %v2763_v6  ;;  %616 = vmatprep.subr.mxu0 %v2798_v14 }
  0x60   :  { %486 = vmatpush1.msra.mxu1 %v2772_v8  ;;  %617 = vmatpush1.msra.mxu0 %v2807_v16 }
  0x61   :  { %487 = vmatprep.subr.mxu1 %v2781_v10  ;;  %618 = vmatprep.subr.mxu0 %v2816_v18 }
  0x62   :  { %488 = vmatpush1.msra.mxu1 %v2789_v12  ;;  %619 = vmatpush1.msra.mxu0 %v2822_v19 }
  0x63   :  { %489 = vmatprep.subr.mxu1 %v2798_v14  ;;  %620 = vmatprep.subr.mxu0 %v2828_v20 }
  0x64   :  { %490 = vmatpush1.msra.mxu1 %v2807_v16  ;;  %621 = vmatpush1.msra.mxu0 %v2833_v21 }
  0x65   :  { %491 = vmatprep.subr.mxu1 %v2816_v18  ;;  %622 = vmatprep.subr.mxu0 %v2841_v22 }
  0x66   :  { %492 = vmatpush1.msra.mxu1 %v2822_v19  ;;  %623 = vmatpush1.msra.mxu0 %v2848_v23 }
  0x67   :  { %493 = vmatprep.subr.mxu1 %v2828_v20  ;;  %624 = vmatprep.subr.mxu0 %v2855_v24 }
  0x68   :  { %494 = vmatpush1.msra.mxu1 %v2833_v21  ;;  %625 = vmatpush1.msra.mxu0 %v2862_v25 }
  0x69   :  { %495 = vmatprep.subr.mxu1 %v2841_v22  ;;  %864 = vmatprep.subr.mxu0 %v2746_v2 }
  0x6a   :  { %496 = vmatpush1.msra.mxu1 %v2848_v23  ;;  %2241 = vmatmul.mubr.msk.f32.gmra.mxu0 %vm153_vm0, %v126_v52 }
  0x6b   :  { %497 = vmatprep.subr.mxu1 %v2855_v24  ;;  %254 = vmatprep.mubr.f32.mxu0 %v2641_v0 }
  0x6c   :  { %498 = vmatpush1.msra.mxu1 %v2862_v25 }
  0x6d   :  { %737 = vmatprep.subr.mxu1 %v2746_v2 }
 0x115   :  { %v244_v33 = vpop.f32.mrf.mxu0 }
 0x116   :  { %v245_v34 = vadd.f32 %v244_v33, %v2914_v31 }
 0x117   :  { %v246_v35 = vpop.f32.mrf.mxu0 }
 0x118   :  { %v247_v37 = vadd.f32 %v246_v35, %v2917_v32 }
 0x11a   :  { %293 = vst.msk [vmem:[#allocation2 + $0x8] sm:$0xff] %vm292_vm1, %v247_v37 }
 0x11d   :  { %v407_v39 = vpop.f32.mrf.mxu1 }
 0x11e   :  { %v408_v40 = vadd.f32 %v407_v39, %v331_v38  ;;  %v127_v38 = vld [vmem:[%s3447_s0 + $0x10] sm:$0xff]  ;;  %v128_v39 = vld [vmem:[%s3447_s0 + $0x18] sm:$0xff] }
 0x11f   :  { %v409_v46 = vpop.f32.mrf.mxu1  ;;  %2242 = vmatmul.mubr.msk.f32.gmra.mxu0 %vm153_vm0, %v127_v38 }
 0x120   :  { %v412_v41 = vadd.f32 %v408_v40, %v245_v34  ;;  %v410_v47 = vadd.f32 %v409_v46, %v335_v45  ;;  %260 = vmatprep.mubr.f32.mxu0 %v2641_v0  ;;  %v129_v40 = vld [vmem:[%s3447_s0 + $0x20] sm:$0xff] }
 0x121   :  { %v309_v50 = vld [vmem:[#allocation2 + $0x8] sm:$0xff] }
 0x122   :  { %v2248_v42 = vmul.f32 -1.442695, %v412_v41 }
 0x123   :  { %2243 = vmatmul.mubr.msk.f32.gmra.mxu0 %vm153_vm0, %v128_v39 }
 0x124   :  { %2431 = vpow2.f32 %v2248_v42  ;;  %266 = vmatprep.mubr.f32.mxu0 %v2641_v0  ;;  %v130_v42 = vld [vmem:[%s3447_s0 + $0x28] sm:$0xff] }
 0x127   :  { %2244 = vmatmul.mubr.msk.f32.gmra.mxu0 %vm153_vm0, %v129_v40 }
 0x128   :  { %272 = vmatprep.mubr.f32.mxu0 %v2641_v0 }
 0x12a   :  { %v250_v59 = vpop.f32.mrf.mxu0 }
 0x12b   :  { %v251_v60 = vadd.f32 %v250_v59, %v2914_v31  ;;  %2245 = vmatmul.mubr.msk.f32.gmra.mxu0 %vm153_vm0, %v130_v42 }
 0x12c   :  { %v252_v61 = vpop.f32.mrf.mxu0  ;;  %278 = vmatprep.mubr.f32.mxu0 %v2641_v0 }
 0x12d   :  { %v253_v62 = vadd.f32 %v252_v61, %v2917_v32 }
 0x12f   :  { %295 = vst.msk [vmem:[#allocation2 + $0x18] sm:$0xff] %vm292_vm1, %v253_v62 }
 0x131   :  { %v2432_v43 = vpop.eup %2431 }
 0x132   :  { %v416_v44 = vadd.f32 1.0, %v2432_v43  ;;  %v131_v43 = vld [vmem:[%s3447_s0 + $0x30] sm:$0xff] }
 0x133   :  { %2246 = vmatmul.mubr.msk.f32.gmra.mxu0 %vm153_vm0, %v131_v43 }
 0x134   :  { %2433 = vrcp.f32 %v416_v44  ;;  %284 = vmatprep.mubr.f32.mxu0 %v2641_v0  ;;  %v132_v44 = vld [vmem:[%s3447_s0 + $0x38] sm:$0xff] }
 0x136   :  { %v436_v36 = vld [vmem:[#allocation2 + $0x18] sm:$0xff] }
 0x137   :  { %2247 = vmatmul.mubr.msk.f32.gmra.mxu0 %vm153_vm0, %v132_v44 }
 0x138   :  { %658 = vmatprep.mubr.f32.mxu0 %v2641_v0 }
 0x141   :  { %v2434_v48 = vpop.eup %2433 }
 0x142   :  { %v419_v49 = vmul.f32 %v2434_v48, %v410_v47  ;;  %v422_v54 = vsub.f32 1.0, %v2434_v48  ;;  %v428_v56 = vmul.f32 0.0, %v2434_v48 }
 0x144   :  { %v420_v51 = vadd.f32 %v419_v49, %v309_v50 }
 0x146   :  { %2435 = vtanh.f32 %v420_v51 }
 0x153   :  { %v2436_v53 = vpop.eup %2435 }
 0x154   :  { %424 = vrot.lane.b32.xlu0 %v2436_v53, %s2642_s30 }
 0x1c6   :  { %v425_v55 = vpop.permute.xlu0 %424 }
 0x1c7   :  { %v427_v57 = vmul.f32 %v425_v55, %v422_v54 }
 0x1c9   :  { %v2930_v58 = vadd.f32 %v428_v56, %v427_v57 }
 0x1cb   :  { %431 = vrot.lane.b32.xlu0 %v2930_v58, %s2642_s30 }
 0x1df   :  { %v256_v50 = vpop.f32.mrf.mxu0 }
 0x1e0   :  { %v257_v51 = vadd.f32 %v256_v50, %v2914_v31 }
 0x1e1   :  { %v258_v52 = vpop.f32.mrf.mxu0 }
 0x1e2   :  { %v259_v53 = vadd.f32 %v258_v52, %v2917_v32 }
 0x1e3   :  { %v262_v54 = vpop.f32.mrf.mxu0 }
 0x1e4   :  { %297 = vst.msk [vmem:[#allocation2 + $0x28] sm:$0xff] %vm292_vm1, %v259_v53  ;;  %v2998_v55 = vadd.f32 %v262_v54, %v2914_v31 }
 0x1e5   :  { %v264_v56 = vpop.f32.mrf.mxu0 }
 0x1e6   :  { %v265_v57 = vadd.f32 %v264_v56, %v2917_v32 }
 0x1e8   :  { %299 = vst.msk [vmem:[#allocation2 + $0x38] sm:$0xff] %vm292_vm1, %v265_v57 }
 0x23d   :  { %v432_v63 = vpop.permute.xlu0 %431 }
 0x23e   :  { %434 = vst.msk [vmem:[#allocation3] sm:$0xff] %vm292_vm1, %v432_v63  ;;  %2249 = vmatmul.mubr.msk.f32.vlgmr.msra.gmra.mxu1 %vm292_vm1, %v432_v63 }
 0x23f   :  { %738 = vmatpush1.msra.mxu1 %v2755_v4  ;;  %785 = vmatprep.mubr.f32.mxu1 %v2641_v0 }
 0x240   :  { %739 = vmatprep.subr.mxu1 %v2763_v6 }
 0x241   :  { %740 = vmatpush1.msra.mxu1 %v2772_v8 }
 0x242   :  { %741 = vmatprep.subr.mxu1 %v2781_v10 }
 0x243   :  { %742 = vmatpush1.msra.mxu1 %v2789_v12 }
 0x244   :  { %743 = vmatprep.subr.mxu1 %v2798_v14 }
 0x245   :  { %744 = vmatpush1.msra.mxu1 %v2807_v16 }
 0x246   :  { %745 = vmatprep.subr.mxu1 %v2816_v18 }
 0x247   :  { %746 = vmatpush1.msra.mxu1 %v2822_v19 }
 0x248   :  { %747 = vmatprep.subr.mxu1 %v2828_v20 }
 0x249   :  { %748 = vmatpush1.msra.mxu1 %v2833_v21 }
 0x24a   :  { %749 = vmatprep.subr.mxu1 %v2841_v22 }
 0x24b   :  { %750 = vmatpush1.msra.mxu1 %v2848_v23 }
 0x24c   :  { %751 = vmatprep.subr.mxu1 %v2855_v24 }
 0x24d   :  { %752 = vmatpush1.msra.mxu1 %v2862_v25 }
 0x24e   :  { %991 = vmatprep.subr.mxu1 %v2746_v2 }
 0x2fe   :  { %v533_v5 = vpop.f32.mrf.mxu1 }
 0x2ff   :  { %v534_v7 = vadd.f32 %v533_v5, %v458_v3 }
 0x300   :  { %v535_v29 = vpop.f32.mrf.mxu1 }
 0x301   :  { %v538_v9 = vadd.f32 %v534_v7, %v251_v60  ;;  %v536_v33 = vadd.f32 %v535_v29, %v462_v17 }
 0x303   :  { %v2250_v11 = vmul.f32 -1.442695, %v538_v9 }
 0x305   :  { %2437 = vpow2.f32 %v2250_v11 }
 0x312   :  { %v2438_v13 = vpop.eup %2437 }
 0x313   :  { %v542_v15 = vadd.f32 1.0, %v2438_v13 }
 0x315   :  { %2439 = vrcp.f32 %v542_v15 }
 0x322   :  { %v2440_v34 = vpop.eup %2439 }
 0x323   :  { %v545_v35 = vmul.f32 %v2440_v34, %v536_v33  ;;  %v548_v45 = vsub.f32 1.0, %v2440_v34  ;;  %v554_v47 = vmul.f32 %v2440_v34, %v2930_v58  ;;  %v268_v58 = vpop.f32.mrf.mxu0 }
 0x324   :  { %v3003_v59 = vadd.f32 %v268_v58, %v2914_v31 }
 0x325   :  { %v546_v37 = vadd.f32 %v545_v35, %v436_v36  ;;  %v270_v60 = vpop.f32.mrf.mxu0 }
 0x326   :  { %v271_v61 = vadd.f32 %v270_v60, %v2917_v32 }
 0x327   :  { %2441 = vtanh.f32 %v546_v37  ;;  %v274_v62 = vpop.f32.mrf.mxu0 }
 0x328   :  { %301 = vst.msk [vmem:[#allocation2 + $0x48] sm:$0xff] %vm292_vm1, %v271_v61  ;;  %v3008_v63 = vadd.f32 %v274_v62, %v2914_v31 }
 0x329   :  { %v276_v1 = vpop.f32.mrf.mxu0 }
 0x32a   :  { %v277_v3 = vadd.f32 %v276_v1, %v2917_v32 }
 0x32b   :  { %v280_v5 = vpop.f32.mrf.mxu0 }
 0x32c   :  { %303 = vst.msk [vmem:[#allocation2 + $0x58] sm:$0xff] %vm292_vm1, %v277_v3  ;;  %v3013_v7 = vadd.f32 %v280_v5, %v2914_v31 }
 0x32d   :  { %v282_v9 = vpop.f32.mrf.mxu0 }
 0x32e   :  { %v283_v11 = vadd.f32 %v282_v9, %v2917_v32 }
 0x32f   :  { %v286_v13 = vpop.f32.mrf.mxu0 }
 0x330   :  { %305 = vst.msk [vmem:[#allocation2 + $0x68] sm:$0xff] %vm292_vm1, %v283_v11  ;;  %v3018_v15 = vadd.f32 %v286_v13, %v2914_v31  ;;  %v580_v31 = vld [vmem:[#allocation11] sm:$0x3] }
 0x331   :  { %v288_v17 = vpop.f32.mrf.mxu0  ;;  %v589_v40 = vrot.slane %v580_v31, %v2911_v30  ;;  %v690_v13 = vld [vmem:[#allocation2 + $0x38] sm:$0xff] }
 0x332   :  { %v289_v29 = vadd.f32 %v288_v17, %v2917_v32  ;;  %v585_v32 = vrot.slane %v580_v31, %v2905_v28 }
 0x334   :  { %v2442_v41 = vpop.eup %2441  ;;  %307 = vst.msk [vmem:[#allocation2 + $0x78] sm:$0xff] %vm292_vm1, %v289_v29 }
 0x335   :  { %550 = vrot.lane.b32.xlu1 %v2442_v41, %s2642_s30 }
 0x3a7   :  { %v551_v46 = vpop.permute.xlu1 %550 }
 0x3a8   :  { %v553_v48 = vmul.f32 %v551_v46, %v548_v45  ;;  %v563_v45 = vld [vmem:[#allocation2 + $0x28] sm:$0xff] }
 0x3aa   :  { %v2990_v49 = vadd.f32 %v554_v47, %v553_v48 }
 0x3ac   :  { %557 = vrot.lane.b32.xlu1 %v2990_v49, %s2642_s30 }
 0x41e   :  { %v558_v33 = vpop.permute.xlu1 %557 }
 0x41f   :  { %561 = vst.msk [vmem:[#allocation3 + $0x8] sm:$0xff] %vm292_vm1, %v558_v33  ;;  %2251 = vmatmul.mubr.msk.f32.vlgmr.msra.gmra.mxu0 %vm292_vm1, %v558_v33 }
 0x420   :  { %865 = vmatpush1.msra.mxu0 %v2755_v4  ;;  %912 = vmatprep.mubr.f32.mxu0 %v2641_v0 }
 0x421   :  { %866 = vmatprep.subr.mxu0 %v2763_v6 }
 0x422   :  { %867 = vmatpush1.msra.mxu0 %v2772_v8 }
 0x423   :  { %868 = vmatprep.subr.mxu0 %v2781_v10 }
 0x424   :  { %869 = vmatpush1.msra.mxu0 %v2789_v12 }
 0x425   :  { %870 = vmatprep.subr.mxu0 %v2798_v14 }
 0x426   :  { %871 = vmatpush1.msra.mxu0 %v2807_v16 }
 0x427   :  { %872 = vmatprep.subr.mxu0 %v2816_v18 }
 0x428   :  { %873 = vmatpush1.msra.mxu0 %v2822_v19 }
 0x429   :  { %874 = vmatprep.subr.mxu0 %v2828_v20 }
 0x42a   :  { %875 = vmatpush1.msra.mxu0 %v2833_v21 }
 0x42b   :  { %876 = vmatprep.subr.mxu0 %v2841_v22 }
 0x42c   :  { %877 = vmatpush1.msra.mxu0 %v2848_v23 }
 0x42d   :  { %878 = vmatprep.subr.mxu0 %v2855_v24 }
 0x42e   :  { %879 = vmatpush1.msra.mxu0 %v2862_v25 }
 0x42f   :  { %1118 = vmatprep.subr.mxu0 %v2746_v2 }
 0x4df   :  { %v660_v34 = vpop.f32.mrf.mxu0 }
 0x4e0   :  { %v661_v35 = vadd.f32 %v660_v34, %v585_v32 }
 0x4e1   :  { %v662_v41 = vpop.f32.mrf.mxu0 }
 0x4e2   :  { %v665_v36 = vadd.f32 %v661_v35, %v257_v51  ;;  %v663_v42 = vadd.f32 %v662_v41, %v589_v40 }
 0x4e4   :  { %v2252_v37 = vmul.f32 -1.442695, %v665_v36 }
 0x4e6   :  { %2443 = vpow2.f32 %v2252_v37 }
 0x4f3   :  { %v2444_v38 = vpop.eup %2443 }
 0x4f4   :  { %v669_v39 = vadd.f32 1.0, %v2444_v38 }
 0x4f6   :  { %2445 = vrcp.f32 %v669_v39 }
 0x503   :  { %v2446_v43 = vpop.eup %2445 }
 0x504   :  { %v672_v44 = vmul.f32 %v2446_v43, %v663_v42  ;;  %v675_v47 = vsub.f32 1.0, %v2446_v43  ;;  %v681_v50 = vmul.f32 %v2446_v43, %v2990_v49  ;;  %v707_v49 = vld [vmem:[#allocation11] sm:$0x3] }
 0x505   :  { %v712_v54 = vrot.slane %v707_v49, %v2905_v28  ;;  %v716_v1 = vrot.slane %v707_v49, %v2911_v30  ;;  %v961_v42 = vld [vmem:[#allocation11] sm:$0x3] }
 0x506   :  { %v673_v46 = vadd.f32 %v672_v44, %v563_v45  ;;  %v966_v43 = vrot.slane %v961_v42, %v2905_v28 }
 0x508   :  { %2447 = vtanh.f32 %v673_v46 }
 0x515   :  { %v2448_v2 = vpop.eup %2447 }
 0x516   :  { %677 = vrot.lane.b32.xlu0 %v2448_v2, %s2642_s30 }
 0x588   :  { %v678_v48 = vpop.permute.xlu0 %677 }
 0x589   :  { %v680_v51 = vmul.f32 %v678_v48, %v675_v47 }
 0x58b   :  { %v682_v52 = vadd.f32 %v681_v50, %v680_v51  ;;  %v970_v50 = vrot.slane %v961_v42, %v2911_v30  ;;  %v3155_v42 = vld [vmem:[#allocation5] sm:$0xff] }
 0x58d   :  { %684 = vrot.lane.b32.xlu1 %v682_v52, %s2642_s30 }
 0x5ff   :  { %v685_v53 = vpop.permute.xlu1 %684 }
 0x600   :  { %688 = vst.msk [vmem:[#allocation3 + $0x10] sm:$0xff] %vm292_vm1, %v685_v53  ;;  %2253 = vmatmul.mubr.msk.f32.vlgmr.msra.gmra.mxu1 %vm292_vm1, %v685_v53 }
 0x601   :  { %992 = vmatpush1.msra.mxu1 %v2755_v4  ;;  %1039 = vmatprep.mubr.f32.mxu1 %v2641_v0 }
 0x602   :  { %993 = vmatprep.subr.mxu1 %v2763_v6 }
 0x603   :  { %994 = vmatpush1.msra.mxu1 %v2772_v8 }
 0x604   :  { %995 = vmatprep.subr.mxu1 %v2781_v10 }
 0x605   :  { %996 = vmatpush1.msra.mxu1 %v2789_v12 }
 0x606   :  { %997 = vmatprep.subr.mxu1 %v2798_v14 }
 0x607   :  { %998 = vmatpush1.msra.mxu1 %v2807_v16 }
 0x608   :  { %999 = vmatprep.subr.mxu1 %v2816_v18 }
 0x609   :  { %1000 = vmatpush1.msra.mxu1 %v2822_v19 }
 0x60a   :  { %1001 = vmatprep.subr.mxu1 %v2828_v20 }
 0x60b   :  { %1002 = vmatpush1.msra.mxu1 %v2833_v21 }
 0x60c   :  { %1003 = vmatprep.subr.mxu1 %v2841_v22 }
 0x60d   :  { %1004 = vmatpush1.msra.mxu1 %v2848_v23 }
 0x60e   :  { %1005 = vmatprep.subr.mxu1 %v2855_v24 }
 0x60f   :  { %1006 = vmatpush1.msra.mxu1 %v2862_v25 }
 0x6c0   :  { %v787_v56 = vpop.f32.mrf.mxu1 }
 0x6c1   :  { %v788_v57 = vadd.f32 %v787_v56, %v712_v54  ;;  %v944_v54 = vld [vmem:[#allocation2 + $0x58] sm:$0xff] }
 0x6c2   :  { %v789_v3 = vpop.f32.mrf.mxu1 }
 0x6c3   :  { %v792_v58 = vadd.f32 %v788_v57, %v2998_v55  ;;  %v790_v5 = vadd.f32 %v789_v3, %v716_v1  ;;  %v1088_v3 = vld [vmem:[#allocation11] sm:$0x3] }
 0x6c5   :  { %v2254_v60 = vmul.f32 -1.442695, %v792_v58 }
 0x6c7   :  { %2449 = vpow2.f32 %v2254_v60 }
 0x6d4   :  { %v2450_v61 = vpop.eup %2449 }
 0x6d5   :  { %v796_v62 = vadd.f32 1.0, %v2450_v61 }
 0x6d7   :  { %2451 = vrcp.f32 %v796_v62 }
 0x6e4   :  { %v2452_v9 = vpop.eup %2451 }
 0x6e5   :  { %v799_v11 = vmul.f32 %v2452_v9, %v790_v5  ;;  %v802_v33 = vsub.f32 1.0, %v2452_v9  ;;  %v808_v55 = vmul.f32 %v2452_v9, %v682_v52  ;;  %v1093_v5 = vrot.slane %v1088_v3, %v2905_v28 }
 0x6e7   :  { %v800_v17 = vadd.f32 %v799_v11, %v690_v13 }
 0x6e9   :  { %2453 = vtanh.f32 %v800_v17 }
 0x6f6   :  { %v2454_v29 = vpop.eup %2453 }
 0x6f7   :  { %804 = vrot.lane.b32.xlu0 %v2454_v29, %s2642_s30 }
 0x769   :  { %v805_v31 = vpop.permute.xlu0 %804 }
 0x76a   :  { %v807_v32 = vmul.f32 %v805_v31, %v802_v33  ;;  %v1097_v31 = vrot.slane %v1088_v3, %v2911_v30  ;;  %v1481_v3 = vld [vmem:[#allocation13 + $0x20] sm:$0xff] }
 0x76c   :  { %v809_v34 = vadd.f32 %v808_v55, %v807_v32 }
 0x76e   :  { %811 = vrot.lane.b32.xlu1 %v809_v34, %s2642_s30 }
 0x7e0   :  { %v812_v35 = vpop.permute.xlu1 %811 }
 0x7e1   :  { %815 = vst.msk [vmem:[#allocation3 + $0x18] sm:$0xff] %vm292_vm1, %v812_v35  ;;  %2255 = vmatmul.mubr.msk.f32.vlgmr.msra.gmra.mxu0 %vm292_vm1, %v812_v35 }
 0x7e2   :  { %1119 = vmatpush1.msra.mxu0 %v2755_v4  ;;  %1166 = vmatprep.mubr.f32.mxu0 %v2641_v0  ;;  %v834_v4 = vld [vmem:[#allocation11] sm:$0x3] }
 0x7e3   :  { %1120 = vmatprep.subr.mxu0 %v2763_v6  ;;  %v839_v6 = vrot.slane %v834_v4, %v2905_v28 }
 0x7e4   :  { %1121 = vmatpush1.msra.mxu0 %v2772_v8 }
 0x7e5   :  { %1122 = vmatprep.subr.mxu0 %v2781_v10 }
 0x7e6   :  { %1123 = vmatpush1.msra.mxu0 %v2789_v12 }
 0x7e7   :  { %1124 = vmatprep.subr.mxu0 %v2798_v14 }
 0x7e8   :  { %1125 = vmatpush1.msra.mxu0 %v2807_v16 }
 0x7e9   :  { %1126 = vmatprep.subr.mxu0 %v2816_v18 }
 0x7ea   :  { %1127 = vmatpush1.msra.mxu0 %v2822_v19  ;;  %v843_v19 = vrot.slane %v834_v4, %v2911_v30  ;;  %v1071_v4 = vld [vmem:[#allocation2 + $0x68] sm:$0xff] }
 0x7eb   :  { %1128 = vmatprep.subr.mxu0 %v2828_v20 }
 0x7ec   :  { %1129 = vmatpush1.msra.mxu0 %v2833_v21 }
 0x7ed   :  { %1130 = vmatprep.subr.mxu0 %v2841_v22 }
 0x7ee   :  { %1131 = vmatpush1.msra.mxu0 %v2848_v23 }
 0x7ef   :  { %1132 = vmatprep.subr.mxu0 %v2855_v24  ;;  %v817_v24 = vld [vmem:[#allocation2 + $0x48] sm:$0xff] }
 0x7f0   :  { %1133 = vmatpush1.msra.mxu0 %v2862_v25 }
 0x8a1   :  { %v914_v8 = vpop.f32.mrf.mxu0 }
 0x8a2   :  { %v915_v10 = vadd.f32 %v914_v8, %v839_v6 }
 0x8a3   :  { %v916_v20 = vpop.f32.mrf.mxu0 }
 0x8a4   :  { %v919_v12 = vadd.f32 %v915_v10, %v3003_v59  ;;  %v917_v21 = vadd.f32 %v916_v20, %v843_v19  ;;  %v1213_v10 = vld [vmem:[%s3452_s5 + $0x70] sm:$0xff]  ;;  %v1208_v19 = vld [vmem:[%s3452_s5 + $0x48] sm:$0xff]  ;;  %v1207_v20 = vld [vmem:[%s3452_s5 + $0x40] sm:$0xff] }
 0x8a6   :  { %v2256_v14 = vmul.f32 -1.442695, %v919_v12  ;;  %v1212_v12 = vld [vmem:[%s3452_s5 + $0x68] sm:$0xff] }
 0x8a8   :  { %2455 = vpow2.f32 %v2256_v14  ;;  %v1211_v14 = vld [vmem:[%s3452_s5 + $0x60] sm:$0xff] }
 0x8b5   :  { %v2456_v16 = vpop.eup %2455 }
 0x8b6   :  { %v923_v18 = vadd.f32 1.0, %v2456_v16  ;;  %v1210_v16 = vld [vmem:[%s3452_s5 + $0x58] sm:$0xff] }
 0x8b8   :  { %2457 = vrcp.f32 %v923_v18  ;;  %v1209_v18 = vld [vmem:[%s3452_s5 + $0x50] sm:$0xff] }
 0x8c5   :  { %v2458_v22 = vpop.eup %2457 }
 0x8c6   :  { %v926_v23 = vmul.f32 %v2458_v22, %v917_v21  ;;  %v929_v37 = vsub.f32 1.0, %v2458_v22  ;;  %v935_v59 = vmul.f32 %v2458_v22, %v809_v34  ;;  %v1206_v21 = vld [vmem:[%s3452_s5 + $0x38] sm:$0xff]  ;;  %v1205_v22 = vld [vmem:[%s3452_s5 + $0x30] sm:$0xff] }
 0x8c8   :  { %v927_v25 = vadd.f32 %v926_v23, %v817_v24  ;;  %v1204_v23 = vld [vmem:[%s3452_s5 + $0x28] sm:$0xff]  ;;  %v1203_v24 = vld [vmem:[%s3452_s5 + $0x20] sm:$0xff] }
 0x8ca   :  { %2459 = vtanh.f32 %v927_v25  ;;  %v1202_v25 = vld [vmem:[%s3452_s5 + $0x18] sm:$0xff] }
 0x8d7   :  { %v2460_v36 = vpop.eup %2459 }
 0x8d8   :  { %931 = vrot.lane.b32.xlu0 %v2460_v36, %s2642_s30  ;;  %v1201_v36 = vld [vmem:[%s3452_s5 + $0x10] sm:$0xff] }
 0x94a   :  { %v932_v38 = vpop.permute.xlu0 %931 }
 0x94b   :  { %v934_v39 = vmul.f32 %v932_v38, %v929_v37  ;;  %v1200_v37 = vld [vmem:[%s3452_s5 + $0x8] sm:$0xff]  ;;  %v1199_v38 = vld [vmem:[%s3452_s5] sm:$0xff] }
 0x94d   :  { %v936_v40 = vadd.f32 %v935_v59, %v934_v39 }
 0x94f   :  { %938 = vrot.lane.b32.xlu1 %v936_v40, %s2642_s30 }
 0x9c1   :  { %v939_v41 = vpop.permute.xlu1 %938 }
 0x9c2   :  { %942 = vst.msk [vmem:[#allocation3 + $0x20] sm:$0xff] %vm292_vm1, %v939_v41  ;;  %2257 = vmatmul.mubr.msk.f32.vlgmr.msra.gmra.mxu1 %vm292_vm1, %v939_v41 }
 0x9c3   :  { %1293 = vmatprep.mubr.f32.mxu1 %v2641_v0 }
 0xa82   :  { %v1041_v44 = vpop.f32.mrf.mxu1 }
 0xa83   :  { %v1042_v45 = vadd.f32 %v1041_v44, %v966_v43  ;;  %v1336_v44 = vrot.slane %v3155_v42, %v2905_v28 }
 0xa84   :  { %v1043_v51 = vpop.f32.mrf.mxu1 }
 0xa85   :  { %v1046_v46 = vadd.f32 %v1042_v45, %v3008_v63  ;;  %v1044_v52 = vadd.f32 %v1043_v51, %v970_v50  ;;  %v3164_v45 = vsub.s32 2, %v2902_v27  ;;  %v3178_v51 = vsub.s32 4, %v2902_v27 }
 0xa87   :  { %v2258_v2 = vmul.f32 -1.442695, %v1046_v46  ;;  %v1350_v46 = vrot.slane %v3155_v42, %v3164_v45 }
 0xa89   :  { %2461 = vpow2.f32 %v2258_v2  ;;  %v3168_v2 = vld [vmem:[#allocation8] sm:$0xff] }
 0xa96   :  { %v2462_v47 = vpop.eup %2461 }
 0xa97   :  { %v1050_v48 = vadd.f32 1.0, %v2462_v47  ;;  %v1408_v47 = vrot.slane %v3168_v2, %v2911_v30 }
 0xa99   :  { %2463 = vrcp.f32 %v1050_v48  ;;  %v3173_v48 = vsub.s32 3, %v2902_v27 }
 0xa9b   :  { %v1357_v50 = vrot.slane %v3155_v42, %v3173_v48 }
 0xaa6   :  { %v2464_v53 = vpop.eup %2463 }
 0xaa7   :  { %v1053_v49 = vmul.f32 %v2464_v53, %v1044_v52  ;;  %v1056_v58 = vsub.f32 1.0, %v2464_v53  ;;  %v1062_v63 = vmul.f32 %v2464_v53, %v936_v40  ;;  %v1364_v52 = vrot.slane %v3155_v42, %v3178_v51 }
 0xaa8   :  { %v3183_v53 = vsub.s32 5, %v2902_v27 }
 0xaa9   :  { %v1054_v56 = vadd.f32 %v1053_v49, %v944_v54  ;;  %v3188_v54 = vsub.s32 6, %v2902_v27 }
 0xaaa   :  { %v1371_v49 = vrot.slane %v3155_v42, %v3183_v53 }
 0xaab   :  { %2465 = vtanh.f32 %v1054_v56  ;;  %v1378_v56 = vrot.slane %v3155_v42, %v3188_v54 }
 0xab8   :  { %v2466_v57 = vpop.eup %2465 }
 0xab9   :  { %1058 = vrot.lane.b32.xlu0 %v2466_v57, %s2642_s30 }
 0xb2b   :  { %v1059_v60 = vpop.permute.xlu0 %1058 }
 0xb2c   :  { %v1061_v61 = vmul.f32 %v1059_v60, %v1056_v58  ;;  %v1325_v60 = vld [vmem:[#allocation3] sm:$0xff] }
 0xb2e   :  { %v1063_v62 = vadd.f32 %v1062_v63, %v1061_v61  ;;  %v1484_v61 = vld [vmem:[#allocation13 + $0x38] sm:$0xff] }
 0xb2f   :  { %2324 = vmatprep.subr.mxu0 %v1484_v61 }
 0xb30   :  { %1065 = vrot.lane.b32.xlu1 %v1063_v62, %s2642_s30 }
 0xba2   :  { %v1066_v1 = vpop.permute.xlu1 %1065 }
 0xba3   :  { %1069 = vst.msk [vmem:[#allocation3 + $0x28] sm:$0xff] %vm292_vm1, %v1066_v1  ;;  %2259 = vmatmul.mubr.msk.f32.vlgmr.msra.gmra.mxu0 %vm292_vm1, %v1066_v1  ;;  %v1482_v1 = vld [vmem:[#allocation13 + $0x28] sm:$0xff] }
 0xba4   :  { %2325 = vmatpush3.msra.mxu0 %v1484_v61  ;;  %v1327_v61 = vld [vmem:[#allocation3 + $0x10] sm:$0xff] }
 0xc63   :  { %v1168_v9 = vpop.f32.mrf.mxu0 }
 0xc64   :  { %v1169_v11 = vadd.f32 %v1168_v9, %v1093_v5  ;;  %v1480_v5 = vld [vmem:[#allocation13 + $0x18] sm:$0xff] }
 0xc65   :  { %v1170_v55 = vpop.f32.mrf.mxu0  ;;  %v1215_v9 = vld [vmem:[#allocation11] sm:$0x3] }
 0xc66   :  { %v1173_v13 = vadd.f32 %v1169_v11, %v3013_v7  ;;  %v1171_v32 = vadd.f32 %v1170_v55, %v1097_v31  ;;  %v1214_v7 = vld [vmem:[%s3452_s5 + $0x78] sm:$0xff]  ;;  %v1220_v11 = vrot.slane %v1215_v9, %v2905_v28 }
 0xc67   :  { %1245 = vmatprep.subr.mxu1 %v1214_v7 }
 0xc68   :  { %v2260_v17 = vmul.f32 -1.442695, %v1173_v13  ;;  %1246 = vmatpush1.msra.mxu1 %v1213_v10  ;;  %v1479_v10 = vld [vmem:[#allocation13 + $0x10] sm:$0xff] }
 0xc69   :  { %1247 = vmatprep.subr.mxu1 %v1212_v12  ;;  %v1478_v12 = vld [vmem:[#allocation13 + $0x8] sm:$0xff] }
 0xc6a   :  { %2467 = vpow2.f32 %v2260_v17  ;;  %1248 = vmatpush1.msra.mxu1 %v1211_v14  ;;  %v3202_v14 = vsub.s32 7, %v2902_v27 }
 0xc6b   :  { %1249 = vmatprep.subr.mxu1 %v1210_v16 }
 0xc6c   :  { %1250 = vmatpush1.msra.mxu1 %v1209_v18  ;;  %v1385_v16 = vrot.slane %v3155_v42, %v3202_v14 }
 0xc6d   :  { %1251 = vmatprep.subr.mxu1 %v1208_v19  ;;  %v1450_v19 = vrot.slane %v3168_v2, %v3202_v14 }
 0xc6e   :  { %1252 = vmatpush1.msra.mxu1 %v1207_v20  ;;  %v1343_v20 = vrot.slane %v3155_v42, %v2911_v30 }
 0xc6f   :  { %1253 = vmatprep.subr.mxu1 %v1206_v21  ;;  %v1401_v21 = vrot.slane %v3168_v2, %v2905_v28 }
 0xc70   :  { %1254 = vmatpush1.msra.mxu1 %v1205_v22  ;;  %v1415_v22 = vrot.slane %v3168_v2, %v3164_v45 }
 0xc71   :  { %1255 = vmatprep.subr.mxu1 %v1204_v23  ;;  %v1621_v23 = vld [vmem:[%s3455_s8 + $0x38] sm:$0xff] }
 0xc72   :  { %1256 = vmatpush1.msra.mxu1 %v1203_v24  ;;  %v1422_v24 = vrot.slane %v3168_v2, %v3173_v48 }
 0xc73   :  { %1257 = vmatprep.subr.mxu1 %v1202_v25  ;;  %v1429_v25 = vrot.slane %v3168_v2, %v3178_v51 }
 0xc74   :  { %1258 = vmatpush1.msra.mxu1 %v1201_v36 }
 0xc75   :  { %1259 = vmatprep.subr.mxu1 %v1200_v37 }
 0xc76   :  { %1260 = vmatpush1.msra.mxu1 %v1199_v38  ;;  %v1620_v38 = vld [vmem:[%s3455_s8 + $0x30] sm:$0xff] }
 0xc77   :  { %v2468_v29 = vpop.eup %2467  ;;  %2352 = vmatprep.subr.mxu1 %v2641_v0 }
 0xc78   :  { %v1177_v33 = vadd.f32 1.0, %v2468_v29 }
 0xc7a   :  { %2469 = vrcp.f32 %v1177_v33 }
 0xc87   :  { %v2470_v34 = vpop.eup %2469 }
 0xc88   :  { %v1180_v35 = vmul.f32 %v2470_v34, %v1171_v32  ;;  %v1183_v59 = vsub.f32 1.0, %v2470_v34  ;;  %v1189_v40 = vmul.f32 %v2470_v34, %v1063_v62  ;;  %v1483_v62 = vld [vmem:[#allocation13 + $0x30] sm:$0xff]  ;;  %v1224_v32 = vrot.slane %v1215_v9, %v2911_v30 }
 0xc89   :  { %2326 = vmatprep.subr.mxu0 %v1483_v62 }
 0xc8a   :  { %v1181_v6 = vadd.f32 %v1180_v35, %v1071_v4  ;;  %2327 = vmatpush3.msra.mxu0 %v1483_v62 }
 0xc8b   :  { %2328 = vmatprep.subr.mxu0 %v1482_v1 }
 0xc8c   :  { %2471 = vtanh.f32 %v1181_v6  ;;  %2329 = vmatpush3.msra.mxu0 %v1482_v1  ;;  %v1436_v1 = vrot.slane %v3168_v2, %v3183_v53 }
 0xc8d   :  { %2330 = vmatprep.subr.mxu0 %v1481_v3 }
 0xc8e   :  { %2331 = vmatpush3.msra.mxu0 %v1481_v3 }
 0xc8f   :  { %2332 = vmatprep.subr.mxu0 %v1480_v5 }
 0xc90   :  { %2333 = vmatpush3.msra.mxu0 %v1480_v5  ;;  %v1328_v5 = vld [vmem:[#allocation3 + $0x18] sm:$0xff] }
 0xc91   :  { %2334 = vmatprep.subr.mxu0 %v1479_v10 }
 0xc92   :  { %2335 = vmatpush3.msra.mxu0 %v1479_v10 }
 0xc93   :  { %2336 = vmatprep.subr.mxu0 %v1478_v12 }
 0xc94   :  { %2337 = vmatpush3.msra.mxu0 %v1478_v12 }
 0xc99   :  { %v2472_v8 = vpop.eup %2471 }
 0xc9a   :  { %1185 = vrot.lane.b32.xlu0 %v2472_v8, %s2642_s30  ;;  %v1198_v8 = vld [vmem:[#allocation2 + $0x78] sm:$0xff] }
 0xd0c   :  { %v1186_v39 = vpop.permute.xlu0 %1185 }
 0xd0d   :  { %v1188_v41 = vmul.f32 %v1186_v39, %v1183_v59  ;;  %v1619_v59 = vld [vmem:[%s3455_s8 + $0x28] sm:$0xff] }
 0xd0f   :  { %v3157_v43 = vadd.f32 %v1189_v40, %v1188_v41  ;;  %v1618_v40 = vld [vmem:[%s3455_s8 + $0x20] sm:$0xff]  ;;  %v1617_v41 = vld [vmem:[%s3455_s8 + $0x18] sm:$0xff] }
 0xd11   :  { %1192 = vrot.lane.b32.xlu1 %v3157_v43, %s2642_s30 }
 0xd15   :  { %1338 = vbcast.lane.b32.xlu1 %v1336_v44, 256 }
 0xd19   :  { %1352 = vbcast.lane.b32.xlu1 %v1350_v46, 256 }
 0xd1d   :  { %1410 = vbcast.lane.b32.xlu1 %v1408_v47, 256  ;;  %v1616_v47 = vld [vmem:[%s3455_s8 + $0x10] sm:$0xff] }
 0xd21   :  { %1359 = vbcast.lane.b32.xlu1 %v1357_v50, 256 }
 0xd25   :  { %1366 = vbcast.lane.b32.xlu1 %v1364_v52, 256 }
 0xd29   :  { %1373 = vbcast.lane.b32.xlu1 %v1371_v49, 256  ;;  %v1615_v49 = vld [vmem:[%s3455_s8 + $0x8] sm:$0xff] }
 0xd2d   :  { %1380 = vbcast.lane.b32.xlu1 %v1378_v56, 256 }
 0xd31   :  { %1387 = vbcast.lane.b32.xlu1 %v1385_v16, 256 }
 0xd35   :  { %1452 = vbcast.lane.b32.xlu1 %v1450_v19, 256 }
 0xd83   :  { %v1193_v57 = vpop.permute.xlu1 %1192 }
 0xd84   :  { %1196 = vst.msk [vmem:[#allocation3 + $0x30] sm:$0xff] %vm292_vm1, %v1193_v57  ;;  %2261 = vmatmul.mubr.msk.f32.vlgmr.msra.gmra.mxu1 %vm292_vm1, %v1193_v57 }
 0xd85   :  { %2353 = vmatpush3.msra.mxu1 %v1621_v23  ;;  %2368 = vmatprep.mubr.msk.f32.mxu1 %vm2643_vm2, %v2641_v0 }
 0xd86   :  { %2354 = vmatprep.subr.mxu1 %v2641_v0 }
 0xd87   :  { %v1339_v58 = vpop.permute.xlu1 %1338  ;;  %2355 = vmatpush3.msra.mxu1 %v1620_v38 }
 0xd88   :  { %v3194_v63 = vmul.f32 %v1339_v58, %v1325_v60  ;;  %2356 = vmatprep.subr.mxu1 %v2641_v0  ;;  %v1326_v58 = vld [vmem:[#allocation3 + $0x8] sm:$0xff]  ;;  %v1614_v60 = vld [vmem:[%s3455_s8] sm:$0xff] }
 0xd89   :  { %2357 = vmatpush3.msra.mxu1 %v1619_v59 }
 0xd8a   :  { %2340 = vmatprep.mubr.msk.f32.mxu0 %vm292_vm1, %v3194_v63  ;;  %2358 = vmatprep.subr.mxu1 %v2641_v0 }
 0xd8b   :  { %v1353_v36 = vpop.permute.xlu1 %1352  ;;  %2359 = vmatpush3.msra.mxu1 %v1618_v40 }
 0xd8c   :  { %2360 = vmatprep.subr.mxu1 %v2641_v0  ;;  %v3259_v3 = vmul.f32 %v1353_v36, %v1327_v61 }
 0xd8d   :  { %2361 = vmatpush3.msra.mxu1 %v1617_v41 }
 0xd8e   :  { %2362 = vmatprep.subr.mxu1 %v2641_v0 }
 0xd8f   :  { %v3224_v37 = vpop.permute.xlu1 %1410  ;;  %2363 = vmatpush3.msra.mxu1 %v1616_v47 }
 0xd90   :  { %2364 = vmatprep.subr.mxu1 %v2641_v0 }
 0xd91   :  { %2365 = vmatpush3.msra.mxu1 %v1615_v49 }
 0xd92   :  { %2366 = vmatprep.subr.mxu1 %v2641_v0 }
 0xd93   :  { %v1360_v39 = vpop.permute.xlu1 %1359  ;;  %2367 = vmatpush3.msra.mxu1 %v1614_v60 }
 0xd94   :  { %2390 = vmatprep.subr.mxu1 %v2641_v0  ;;  %v3268_v9 = vmul.f32 %v1360_v39, %v1328_v5 }
 0xd97   :  { %v1367_v42 = vpop.permute.xlu1 %1366 }
 0xe44   :  { %v1295_v13 = vpop.f32.mrf.mxu1 }
 0xe45   :  { %v1296_v17 = vadd.f32 %v1295_v13, %v1220_v11  ;;  %v1329_v11 = vld [vmem:[#allocation3 + $0x20] sm:$0xff]  ;;  %v1443_v13 = vrot.slane %v3168_v2, %v3188_v54  ;;  %v3286_v2 = vld [vmem:[#allocation10] sm:$0xff] }
 0xe46   :  { %v1297_v34 = vpop.f32.mrf.mxu1  ;;  %v1748_v10 = vrot.slane %v3286_v2, %v3202_v14  ;;  %v1741_v12 = vrot.slane %v3286_v2, %v3188_v54  ;;  %vm1840_vm10 = vcmp.eq.f32.partialorder %v3286_v2, 0.0 }
 0xe47   :  { %v1300_v29 = vadd.f32 %v1296_v17, %v3018_v15  ;;  %v1298_v35 = vadd.f32 %v1297_v34, %v1224_v32  ;;  %v1477_v15 = vld [vmem:[#allocation13] sm:$0xff]  ;;  %v3272_v17 = vmul.f32 %v1367_v42, %v1329_v11  ;;  %v1706_v34 = vrot.slane %v3286_v2, %v2911_v30 }
 0xe48   :  { %2338 = vmatprep.subr.mxu0 %v1477_v15 }
 0xe49   :  { %v2262_v33 = vmul.f32 -1.442695, %v1300_v29  ;;  %2339 = vmatpush3.msra.mxu0 %v1477_v15  ;;  %1708 = vbcast.lane.b32.xlu1 %v1706_v34, 256  ;;  %v2002_v34 = vld [vmem:[%s3458_s11 + $0x20] sm:$0xff] }
 0xe4a   :  { %2371 = vmatprep.subr.mxu0 %v2641_v0 }
 0xe4b   :  { %2473 = vpow2.f32 %v2262_v33  ;;  %v1330_v33 = vld [vmem:[#allocation3 + $0x28] sm:$0xff] }
 0xe58   :  { %v2474_v31 = vpop.eup %2473 }
 0xe59   :  { %v1304_v55 = vadd.f32 1.0, %v2474_v31 }
 0xe5b   :  { %2475 = vrcp.f32 %v1304_v55  ;;  %v1331_v55 = vld [vmem:[#allocation3 + $0x30] sm:$0xff] }
 0xe68   :  { %v2476_v4 = vpop.eup %2475 }
 0xe69   :  { %v1307_v6 = vmul.f32 %v2476_v4, %v1298_v35  ;;  %v1310_v44 = vsub.f32 1.0, %v2476_v4  ;;  %v1316_v50 = vmul.f32 %v2476_v4, %v3157_v43  ;;  %v1374_v43 = vpop.permute.xlu1 %1373  ;;  %v1699_v35 = vrot.slane %v3286_v2, %v2905_v28 }
 0xe6a   :  { %v3278_v31 = vmul.f32 %v1374_v43, %v1330_v33  ;;  %v1720_v4 = vrot.slane %v3286_v2, %v3173_v48  ;;  %v2004_v33 = vld [vmem:[%s3458_s11 + $0x30] sm:$0xff] }
 0xe6b   :  { %v1308_v7 = vadd.f32 %v1307_v6, %v1198_v8  ;;  %v1713_v6 = vrot.slane %v3286_v2, %v3164_v45  ;;  %v1734_v8 = vrot.slane %v3286_v2, %v3183_v53 }
 0xe6c   :  { %1722 = vbcast.lane.b32.xlu1 %v1720_v4, 256  ;;  %v2000_v4 = vld [vmem:[%s3458_s11 + $0x10] sm:$0xff] }
 0xe6d   :  { %2477 = vtanh.f32 %v1308_v7  ;;  %v1381_v29 = vpop.permute.xlu1 %1380  ;;  %v1727_v7 = vrot.slane %v3286_v2, %v3178_v51 }
 0xe6e   :  { %v3280_v32 = vmul.f32 %v1381_v29, %v1331_v55  ;;  %v2005_v29 = vld [vmem:[%s3458_s11 + $0x38] sm:$0xff]  ;;  %v2003_v55 = vld [vmem:[%s3458_s11 + $0x28] sm:$0xff] }
 0xe70   :  { %1736 = vbcast.lane.b32.xlu1 %v1734_v8, 256  ;;  %v1998_v8 = vld [vmem:[%s3458_s11] sm:$0xff] }
 0xe71   :  { %v1388_v40 = vpop.permute.xlu1 %1387 }
 0xe74   :  { %1750 = vbcast.lane.b32.xlu1 %v1748_v10, 256 }
 0xe7a   :  { %v2478_v18 = vpop.eup %2477 }
 0xe7b   :  { %1312 = vrot.lane.b32.xlu0 %v2478_v18, %s2642_s30 }
 0xe7f   :  { %1345 = vbcast.lane.b32.xlu0 %v1343_v20, 256 }
 0xe83   :  { %1403 = vbcast.lane.b32.xlu0 %v1401_v21, 256 }
 0xe87   :  { %1417 = vbcast.lane.b32.xlu0 %v1415_v22, 256 }
 0xe8b   :  { %1424 = vbcast.lane.b32.xlu0 %v1422_v24, 256 }
 0xe8f   :  { %1431 = vbcast.lane.b32.xlu0 %v1429_v25, 256 }
 0xeed   :  { %v1313_v46 = vpop.permute.xlu0 %1312 }
 0xeee   :  { %v1315_v52 = vmul.f32 %v1313_v46, %v1310_v44 }
 0xef0   :  { %v1317_v56 = vadd.f32 %v1316_v50, %v1315_v52 }
 0xef1   :  { %v1346_v57 = vpop.permute.xlu0 %1345 }
 0xef2   :  { %v3254_v62 = vmul.f32 %v1346_v57, %v1326_v58  ;;  %1319 = vrot.lane.b32.xlu0 %v1317_v56, %s2642_s30  ;;  %v1453_v57 = vpop.permute.xlu1 %1452 }
 0xef4   :  { %2341 = vmatmul.mubr.msk.f32.vlgmr.msra.gmra.mxu0 %vm292_vm1, %v3254_v62  ;;  %v1455_v21 = vmul.f32 %v3224_v37, %v3254_v62 }
 0xef5   :  { %2343 = vmatprep.mubr.msk.f32.mxu0 %vm292_vm1, %v3259_v3  ;;  %v1404_v15 = vpop.permute.xlu0 %1403 }
 0xef6   :  { %1438 = vbcast.lane.b32.xlu0 %v1436_v1, 256  ;;  %v1454_v19 = vmul.f32 %v1404_v15, %v3194_v63  ;;  %v1463_v36 = vsel %vm292_vm1, %v1455_v21, 0.0  ;;  %v1709_v15 = vpop.permute.xlu1 %1708 }
 0xef8   :  { %2344 = vmatmul.mubr.msk.f32.gmra.mxu0 %vm292_vm1, %v3268_v9  ;;  %v1462_v23 = vsel %vm292_vm1, %v1454_v19, 0.0 }
 0xef9   :  { %2346 = vmatprep.mubr.msk.f32.mxu0 %vm292_vm1, %v3272_v17  ;;  %v1418_v16 = vpop.permute.xlu0 %1417  ;;  %v1464_v39 = vadd.f32 %v1463_v36, %v1462_v23 }
 0xefa   :  { %1445 = vbcast.lane.b32.xlu0 %v1443_v13, 256  ;;  %v1456_v22 = vmul.f32 %v1418_v16, %v3259_v3  ;;  %v1723_v19 = vpop.permute.xlu1 %1722 }
 0xefc   :  { %2347 = vmatmul.mubr.msk.f32.gmra.mxu0 %vm292_vm1, %v3278_v31  ;;  %v1465_v38 = vsel %vm292_vm1, %v1456_v22, 0.0 }
 0xefd   :  { %2349 = vmatprep.mubr.msk.f32.mxu0 %vm292_vm1, %v3280_v32  ;;  %v1425_v18 = vpop.permute.xlu0 %1424  ;;  %v1466_v37 = vadd.f32 %v1465_v38, %v1464_v39 }
 0xefe   :  { %1701 = vbcast.lane.b32.xlu0 %v1699_v35, 256  ;;  %v1457_v24 = vmul.f32 %v1425_v18, %v3268_v9  ;;  %v2001_v35 = vld [vmem:[%s3458_s11 + $0x18] sm:$0xff]  ;;  %v1737_v23 = vpop.permute.xlu1 %1736 }
 0xf00   :  { %v1467_v41 = vsel %vm292_vm1, %v1457_v24, 0.0 }
 0xf01   :  { %v1432_v20 = vpop.permute.xlu0 %1431  ;;  %v1468_v47 = vadd.f32 %v1467_v41, %v1466_v37 }
 0xf02   :  { %1715 = vbcast.lane.b32.xlu0 %v1713_v6, 256  ;;  %v1458_v59 = vmul.f32 %v1432_v20, %v3272_v17  ;;  %v1999_v6 = vld [vmem:[%s3458_s11 + $0x8] sm:$0xff]  ;;  %v1751_v38 = vpop.permute.xlu1 %1750 }
 0xf04   :  { %v1469_v44 = vsel %vm292_vm1, %v1458_v59, 0.0 }
 0xf05   :  { %v1470_v52 = vadd.f32 %v1469_v44, %v1468_v47 }
 0xf06   :  { %1729 = vbcast.lane.b32.xlu0 %v1727_v7, 256 }
 0xf0a   :  { %1743 = vbcast.lane.b32.xlu0 %v1741_v12, 256 }
 0xf64   :  { %v1320_v25 = vpop.permute.xlu0 %1319 }
 0xf65   :  { %1323 = vst.msk [vmem:[#allocation3 + $0x38] sm:$0xff] %vm292_vm1, %v1320_v25 }
 0xf68   :  { %v1439_v42 = vpop.permute.xlu0 %1438 }
 0xf69   :  { %v1459_v46 = vmul.f32 %v1439_v42, %v3278_v31 }
 0xf6b   :  { %v1471_v50 = vsel %vm292_vm1, %v1459_v46, 0.0 }
 0xf6c   :  { %v1332_v49 = vld [vmem:[#allocation3 + $0x38] sm:$0xff]  ;;  %v1446_v56 = vpop.permute.xlu0 %1445  ;;  %v1472_v61 = vadd.f32 %v1471_v50, %v1470_v52 }
 0xf6d   :  { %v3318_v58 = vmul.f32 %v1388_v40, %v1332_v49  ;;  %v1460_v60 = vmul.f32 %v1446_v56, %v3280_v32 }
 0xf6f   :  { %v1473_v43 = vsel %vm292_vm1, %v1460_v60, 0.0  ;;  %v1461_v1 = vmul.f32 %v1453_v57, %v3318_v58  ;;  %2350 = vmatmul.mubr.msk.f32.gmra.mxu0 %vm292_vm1, %v3318_v58 }
 0xf70   :  { %v1474_v5 = vadd.f32 %v1473_v43, %v1472_v61  ;;  %2387 = vmatprep.mubr.msk.f32.mxu0 %vm2643_vm2, %v2641_v0  ;;  %v1702_v10 = vpop.permute.xlu0 %1701 }
 0xf71   :  { %v1475_v11 = vsel %vm292_vm1, %v1461_v1, 0.0 }
 0xf72   :  { %v1476_v13 = vadd.f32 %v1475_v11, %v1474_v5 }
 0xf74   :  { %2369 = vmatmul.mubr.msk.f32.vlgmr.msra.gmra.mxu1 %vm292_vm1, %v1476_v13  ;;  %v1716_v18 = vpop.permute.xlu0 %1715 }
 0xf75   :  { %2391 = vmatpush3.msra.mxu1 %v2005_v29  ;;  %2406 = vmatprep.mubr.msk.f32.mxu1 %vm2643_vm2, %v2641_v0 }
 0xf76   :  { %2392 = vmatprep.subr.mxu1 %v2641_v0 }
 0xf77   :  { %2393 = vmatpush3.msra.mxu1 %v2004_v33 }
 0xf78   :  { %2394 = vmatprep.subr.mxu1 %v2641_v0  ;;  %v1730_v21 = vpop.permute.xlu0 %1729 }
 0xf79   :  { %2395 = vmatpush3.msra.mxu1 %v2003_v55 }
 0xf7a   :  { %2396 = vmatprep.subr.mxu1 %v2641_v0 }
 0xf7b   :  { %2397 = vmatpush3.msra.mxu1 %v2002_v34 }
 0xf7c   :  { %2398 = vmatprep.subr.mxu1 %v2641_v0  ;;  %v1744_v25 = vpop.permute.xlu0 %1743 }
 0xf7d   :  { %2399 = vmatpush3.msra.mxu1 %v2001_v35 }
 0xf7e   :  { %2400 = vmatprep.subr.mxu1 %v2641_v0 }
 0xf7f   :  { %2401 = vmatpush3.msra.mxu1 %v2000_v4 }
 0xf80   :  { %2402 = vmatprep.subr.mxu1 %v2641_v0 }
 0xf81   :  { %2403 = vmatpush3.msra.mxu1 %v1999_v6 }
 0xf82   :  { %2404 = vmatprep.subr.mxu1 %v2641_v0 }
 0xf83   :  { %2405 = vmatpush3.msra.mxu1 %v1998_v8 }
 0xf84   :  { %2407 = vmatmul.mubr.msk.f32.vlgmr.msra.gmra.mxu1 %vm292_vm1, %v1476_v13 }
 0xfb4   :  { %v2342_v7 = vpop.f32.mrf.mxu0 }
 0xfb6   :  { %v1575_v12 = vpop.f32.mrf.mxu0 }
 0xfb8   :  { %v2345_v16 = vpop.f32.mrf.mxu0 }
 0xfba   :  { %v1585_v20 = vpop.f32.mrf.mxu0 }
 0xfbc   :  { %v2348_v22 = vpop.f32.mrf.mxu0 }
 0xfbe   :  { %v1595_v24 = vpop.f32.mrf.mxu0 }
0x102f   :  { %v2351_v36 = vpop.f32.mrf.mxu0 }
0x1031   :  { %v1605_v52 = vpop.f32.mrf.mxu0 }
0x1034   :  { %v1691_v59 = vpop.f32.mrf.mxu1 }
0x1035   :  { %v1753_v39 = vmul.f32 %v1709_v15, %v1691_v59  ;;  %v1752_v40 = vmul.f32 %v1702_v10, %v1691_v59  ;;  %v1756_v41 = vmul.f32 %v1730_v21, %v1691_v59  ;;  %v1754_v37 = vmul.f32 %v1716_v18, %v1691_v59 }
0x1036   :  { %v2370_v42 = vpop.f32.mrf.mxu1  ;;  %v1758_v44 = vmul.f32 %v1744_v25, %v1691_v59  ;;  %v1755_v46 = vmul.f32 %v1723_v19, %v1691_v59  ;;  %v1757_v47 = vmul.f32 %v1737_v23, %v1691_v59  ;;  %v1759_v50 = vmul.f32 %v1751_v38, %v1691_v59 }
0x1037   :  { %v1761_v49 = vadd.f32 %v2342_v7, %v1753_v39  ;;  %v1760_v56 = vadd.f32 %v1752_v40, %v1575_v12  ;;  %v1764_v57 = vadd.f32 %v1756_v41, %v1595_v24  ;;  %v1762_v60 = vadd.f32 %v1754_v37, %v1585_v20 }
0x1038   :  { %v1766_v61 = vadd.f32 %v1758_v44, %v1605_v52  ;;  %v1763_v43 = vadd.f32 %v2345_v16, %v1755_v46  ;;  %v1765_v1 = vadd.f32 %v2348_v22, %v1757_v47  ;;  %v1767_v29 = vadd.f32 %v2351_v36, %v1759_v50  ;;  %v2272_v16 = vld [vmem:[#allocation14] ss:$0 sm:$0xff] }
0x1039   :  { %v1770_v5 = vmul.f32 0.16666667, %v1761_v49  ;;  %v1769_v11 = vmul.f32 0.16666667, %v1760_v56  ;;  %v1773_v13 = vmul.f32 0.16666667, %v1764_v57 }
0x103a   :  { %v1771_v33 = vmul.f32 0.16666667, %v1762_v60  ;;  %v1775_v55 = vmul.f32 0.16666667, %v1766_v61  ;;  %v1772_v34 = vmul.f32 0.16666667, %v1763_v43 }
0x103b   :  { %v1778_v35 = vadd.f32 0.5, %v1770_v5  ;;  %v1777_v4 = vadd.f32 0.5, %v1769_v11  ;;  %v1781_v6 = vadd.f32 0.5, %v1773_v13  ;;  %v1774_v8 = vmul.f32 0.16666667, %v1765_v1 }
0x103c   :  { %v1779_v10 = vadd.f32 0.5, %v1771_v33  ;;  %v1783_v15 = vadd.f32 0.5, %v1775_v55  ;;  %v1780_v7 = vadd.f32 0.5, %v1772_v34  ;;  %v1776_v20 = vmul.f32 0.16666667, %v1767_v29 }
0x103d   :  { %v1786_v12 = vmax.f32 %v1778_v35, 0.0  ;;  %v1785_v18 = vmax.f32 %v1777_v4, 0.0  ;;  %v1789_v19 = vmax.f32 %v1781_v6, 0.0  ;;  %v1782_v24 = vadd.f32 0.5, %v1774_v8 }
0x103e   :  { %v1787_v21 = vmax.f32 %v1779_v10, 0.0  ;;  %v1791_v22 = vmax.f32 %v1783_v15, 0.0  ;;  %v1788_v23 = vmax.f32 %v1780_v7, 0.0  ;;  %v1784_v44 = vadd.f32 0.5, %v1776_v20 }
0x103f   :  { %v1794_v25 = vmin.f32 %v1786_v12, 1.0  ;;  %v1793_v36 = vmin.f32 %v1785_v18, 1.0  ;;  %v1797_v38 = vmin.f32 %v1789_v19, 1.0  ;;  %v1790_v42 = vmax.f32 %v1782_v24, 0.0 }
0x1040   :  { %v1795_v59 = vmin.f32 %v1787_v21, 1.0  ;;  %v1799_v41 = vmin.f32 %v1791_v22, 1.0  ;;  %v1796_v37 = vmin.f32 %v1788_v23, 1.0  ;;  %v1792_v60 = vmax.f32 %v1784_v44, 0.0 }
0x1041   :  { %v1809_v39 = vmul.f32 %v2272_v16, %v1794_v25  ;;  %v1808_v40 = vmul.f32 %v2272_v16, %v1793_v36  ;;  %v1812_v50 = vmul.f32 %v2272_v16, %v1797_v38  ;;  %v1798_v57 = vmin.f32 %v1790_v42, 1.0 }
0x1042   :  { %v1810_v52 = vmul.f32 %v2272_v16, %v1795_v59  ;;  %v1814_v1 = vmul.f32 %v2272_v16, %v1799_v41  ;;  %v1811_v5 = vmul.f32 %v2272_v16, %v1796_v37  ;;  %v1800_v33 = vmin.f32 %v1792_v60, 1.0 }
0x1043   :  { %v1819_v46 = vsel %vm292_vm1, %v1809_v39, 0.0  ;;  %v1816_v47 = vsel %vm292_vm1, %v1808_v40, 0.0  ;;  %v1828_v61 = vsel %vm292_vm1, %v1812_v50, 0.0  ;;  %v1813_v29 = vmul.f32 %v2272_v16, %v1798_v57 }
0x1044   :  { %v3365_v49 = vpop.f32.mrf.mxu1  ;;  %1820 = vadd.xlane.f32.xlu1 %v1819_v46  ;;  %1817 = vadd.xlane.f32.xlu0 %v1816_v47  ;;  %v1822_v43 = vsel %vm292_vm1, %v1810_v52, 0.0  ;;  %v1834_v11 = vsel %vm292_vm1, %v1814_v1, 0.0  ;;  %v1825_v13 = vsel %vm292_vm1, %v1811_v5, 0.0  ;;  %v1815_v34 = vmul.f32 %v2272_v16, %v1800_v33 }
0x1045   :  { %v1831_v55 = vsel %vm292_vm1, %v1813_v29, 0.0  ;;  %v1850_v4 = vand.u32 127, %v143_v26 }
0x1046   :  { %v2408_v56 = vpop.f32.mrf.mxu1  ;;  %v1837_v35 = vsel %vm292_vm1, %v1815_v34, 0.0  ;;  %v2012_v34 = vld [vmem:[%s3459_s12 + $0x30] sm:$0xff] }
0x1047   :  { %v1853_v8 = vsub.s32 %v1850_v4, %v2902_v27 }
0x1048   :  { %1829 = vadd.xlane.f32.xlu1 %v1828_v61  ;;  %1823 = vadd.xlane.f32.xlu0 %v1822_v43 }
0x104c   :  { %1835 = vadd.xlane.f32.xlu1 %v1834_v11  ;;  %1826 = vadd.xlane.f32.xlu0 %v1825_v13 }
0x1050   :  { %1832 = vadd.xlane.f32.xlu0 %v1831_v55  ;;  %v2013_v55 = vld [vmem:[%s3459_s12 + $0x38] sm:$0xff] }
0x1051   :  { %2372 = vmatpush3.msra.mxu0 %v2013_v55 }
0x1052   :  { %2373 = vmatprep.subr.mxu0 %v2641_v0 }
0x1053   :  { %2374 = vmatpush3.msra.mxu0 %v2012_v34 }
0x1054   :  { %1838 = vadd.xlane.f32.xlu0 %v1837_v35  ;;  %2375 = vmatprep.subr.mxu0 %v2641_v0 }
0x10cd   :  { %v1818_v6 = vpop.xlane.xlu0 %1817  ;;  %v1821_v10 = vpop.xlane.xlu1 %1820 }
0x10ce   :  { %v1858_v7 = vrot.slane %v1821_v10, %v1853_v8  ;;  %v1854_v12 = vrot.slane %v1818_v6, %v1853_v8  ;;  %v2011_v10 = vld [vmem:[%s3459_s12 + $0x28] sm:$0xff] }
0x10cf   :  { %2376 = vmatpush3.msra.mxu0 %v2011_v10 }
0x10d0   :  { %v1884_v16 = vsel %vm1883_vm3, %v1858_v7, %v1854_v12  ;;  %2377 = vmatprep.subr.mxu0 %v2641_v0  ;;  %v2008_v12 = vld [vmem:[%s3459_s12 + $0x10] sm:$0xff] }
0x10d1   :  { %v1824_v15 = vpop.xlane.xlu0 %1823  ;;  %v1830_v19 = vpop.xlane.xlu1 %1829 }
0x10d2   :  { %v1862_v18 = vrot.slane %v1824_v15, %v1853_v8  ;;  %v1870_v24 = vrot.slane %v1830_v19, %v1853_v8  ;;  %v2010_v15 = vld [vmem:[%s3459_s12 + $0x20] sm:$0xff] }
0x10d3   :  { %2378 = vmatpush3.msra.mxu0 %v2010_v15  ;;  %v2006_v19 = vld [vmem:[%s3459_s12] sm:$0xff] }
0x10d4   :  { %v1886_v22 = vsel %vm1885_vm4, %v1862_v18, %v1884_v16  ;;  %2379 = vmatprep.subr.mxu0 %v2641_v0 }
0x10d5   :  { %v1827_v20 = vpop.xlane.xlu0 %1826  ;;  %v1836_v25 = vpop.xlane.xlu1 %1835 }
0x10d6   :  { %v1866_v21 = vrot.slane %v1827_v20, %v1853_v8  ;;  %v1878_v59 = vrot.slane %v1836_v25, %v1853_v8 }
0x10d8   :  { %v1888_v23 = vsel %vm1887_vm5, %v1866_v21, %v1886_v22 }
0x10d9   :  { %v1833_v26 = vpop.xlane.xlu0 %1832  ;;  %v1890_v36 = vsel %vm1889_vm6, %v1870_v24, %v1888_v23 }
0x10da   :  { %v1874_v27 = vrot.slane %v1833_v26, %v1853_v8 }
0x10dc   :  { %v1892_v38 = vsel %vm1891_vm7, %v1874_v27, %v1890_v36 }
0x10dd   :  { %v1839_v39 = vpop.xlane.xlu0 %1838  ;;  %v1894_v41 = vsel %vm1893_vm8, %v1878_v59, %v1892_v38 }
0x10de   :  { %v1882_v40 = vrot.slane %v1839_v39, %v1853_v8 }
0x10e0   :  { %v1896_v37 = vsel %vm1895_vm9, %v1882_v40, %v1894_v41 }
0x10e1   :  { %v1898_v42 = vsel %vm1840_vm10, -1e+09, %v1896_v37 }
0x10e2   :  { %v1900_v44 = vsel %vm1899_vm11, %v1898_v42, -inf }
0x10e3   :  { %v1901_v46 = vrot.slane %v1900_v44, 4 }
0x10e5   :  { %v1902_v47 = vmax.f32 %v1900_v44, %v1901_v46 }
0x10e7   :  { %v1903_v50 = vrot.slane %v1902_v47, 2 }
0x10e9   :  { %v1904_v52 = vmax.f32 %v1902_v47, %v1903_v50 }
0x10eb   :  { %v1905_v56 = vrot.slane %v1904_v52, 1 }
0x10ed   :  { %v1906_v57 = vmax.f32 %v1904_v52, %v1905_v56 }
0x10ef   :  { %v1907_v60 = vsub.f32 %v1898_v42, %v1906_v57 }
0x10f1   :  { %v1908_v61 = vmul.f32 1.442695, %v1907_v60 }
0x10f3   :  { %2479 = vpow2.f32 %v1908_v61 }
0x1100   :  { %v2480_v43 = vpop.eup %2479 }
0x1101   :  { %v1910_v1 = vsel %vm1899_vm11, %v2480_v43, 0.0 }
0x1102   :  { %v1911_v5 = vrot.slane %v1910_v1, 4 }
0x1104   :  { %v1912_v11 = vadd.f32 %v1911_v5, %v1910_v1 }
0x1106   :  { %v1913_v2 = vrot.slane %v1912_v11, 2 }
0x1108   :  { %v1914_v13 = vadd.f32 %v1913_v2, %v1912_v11 }
0x110a   :  { %v1915_v29 = vrot.slane %v1914_v13, 1 }
0x110c   :  { %v1916_v33 = vadd.f32 %v1915_v29, %v1914_v13 }
0x110e   :  { %2481 = vrcp.f32 %v1916_v33 }
0x111b   :  { %v2482_v35 = vpop.eup %2481 }
0x111c   :  { %v1918_v4 = vmul.f32 %v2482_v35, %v2480_v43 }
0x111e   :  { %v1929_v6 = vrot.slane %v1918_v4, %v2911_v30  ;;  %v1922_v8 = vrot.slane %v1918_v4, %v2905_v28  ;;  %v1950_v7 = vrot.slane %v1918_v4, %v3178_v51  ;;  %v1936_v30 = vrot.slane %v1918_v4, %v3164_v45  ;;  %v2009_v28 = vld [vmem:[%s3459_s12 + $0x18] sm:$0xff]  ;;  %v2007_v45 = vld [vmem:[%s3459_s12 + $0x8] sm:$0xff] }
0x111f   :  { %2380 = vmatpush3.msra.mxu0 %v2009_v28  ;;  %v1964_v18 = vrot.slane %v1918_v4, %v3188_v54  ;;  %v1943_v51 = vrot.slane %v1918_v4, %v3173_v48  ;;  %v1957_v20 = vrot.slane %v1918_v4, %v3183_v53  ;;  %v1971_v48 = vrot.slane %v1918_v4, %v3202_v14 }
0x1120   :  { %1931 = vbcast.lane.b32.xlu0 %v1929_v6, 256  ;;  %1924 = vbcast.lane.b32.xlu1 %v1922_v8, 256 }
0x1121   :  { %2381 = vmatprep.subr.mxu0 %v2641_v0 }
0x1122   :  { %2382 = vmatpush3.msra.mxu0 %v2008_v12 }
0x1123   :  { %2383 = vmatprep.subr.mxu0 %v2641_v0 }
0x1124   :  { %1952 = vbcast.lane.b32.xlu0 %v1950_v7, 256  ;;  %1938 = vbcast.lane.b32.xlu1 %v1936_v30, 256 }
0x1125   :  { %2384 = vmatpush3.msra.mxu0 %v2007_v45 }
0x1126   :  { %2385 = vmatprep.subr.mxu0 %v2641_v0 }
0x1127   :  { %2386 = vmatpush3.msra.mxu0 %v2006_v19 }
0x1128   :  { %1966 = vbcast.lane.b32.xlu0 %v1964_v18, 256  ;;  %1945 = vbcast.lane.b32.xlu1 %v1943_v51, 256 }
0x1129   :  { %2409 = vmatprep.subr.bf16.mxu0 %v2641_v0 }
0x112c   :  { %1959 = vbcast.lane.b32.xlu1 %v1957_v20, 256 }
0x1130   :  { %1973 = vbcast.lane.b32.xlu1 %v1971_v48, 256 }
0x1192   :  { %v1932_v54 = vpop.permute.xlu0 %1931  ;;  %v1925_v16 = vpop.permute.xlu1 %1924 }
0x1193   :  { %v1976_v21 = vmul.f32 %v1932_v54, %v3254_v62  ;;  %v1975_v22 = vmul.f32 %v1925_v16, %v3194_v63 }
0x1195   :  { %v1984_v53 = vsel %vm292_vm1, %v1976_v21, 0.0  ;;  %v1983_v26 = vsel %vm292_vm1, %v1975_v22, 0.0 }
0x1196   :  { %v1953_v23 = vpop.permute.xlu0 %1952  ;;  %v1939_v24 = vpop.permute.xlu1 %1938  ;;  %v1985_v36 = vadd.f32 %v1984_v53, %v1983_v26 }
0x1197   :  { %v1977_v25 = vmul.f32 %v1939_v24, %v3259_v3  ;;  %v1979_v14 = vmul.f32 %v1953_v23, %v3272_v17 }
0x1199   :  { %v1986_v27 = vsel %vm292_vm1, %v1977_v25, 0.0  ;;  %v1990_v37 = vsel %vm292_vm1, %v1979_v14, 0.0 }
0x119a   :  { %v1946_v38 = vpop.permute.xlu1 %1945  ;;  %v1987_v39 = vadd.f32 %v1986_v27, %v1985_v36  ;;  %v1967_v62 = vpop.permute.xlu0 %1966 }
0x119b   :  { %v1978_v59 = vmul.f32 %v1946_v38, %v3268_v9  ;;  %v1981_v42 = vmul.f32 %v1967_v62, %v3280_v32  ;;  %v2430_v32 = vld [vmem:[%s3460_s13] sm:$0xff]  }
0x119d   :  { %v1988_v63 = vsel %vm292_vm1, %v1978_v59, 0.0  ;;  %v1994_v17 = vsel %vm292_vm1, %v1981_v42, 0.0 }
0x119e   :  { %v1989_v40 = vadd.f32 %v1988_v63, %v1987_v39  ;;  %v1960_v41 = vpop.permute.xlu1 %1959 }
0x119f   :  { %v1980_v3 = vmul.f32 %v1960_v41, %v3278_v31  ;;  %v2429_v31 = vld [vmem:[%s3460_s13 + $0x8] sm:$0xff]   ;;  %s2603_s13 = scalar_lea.vmem %s2229_s27, 128 }
0x11a0   :  { %v1991_v44 = vadd.f32 %v1990_v37, %v1989_v40  ;;  %p2604_p2 = scmp.ne.s32.totalorder %s2229_s27, %s2603_s13  ;;  %p2609_p4 = scmp.lt.s32.totalorder %s2603_s13, %s2603_s13 }
0x11a1   :  { %v1992_v46 = vsel %vm292_vm1, %v1980_v3, 0.0 }
0x11a2   :  { %v1993_v47 = vadd.f32 %v1992_v46, %v1991_v44  ;;  %v1974_v50 = vpop.permute.xlu1 %1973  ;;  %p2610_p5 = por %p2609_p4, %p2608_p3 }
0x11a3   :  { %v1982_v9 = vmul.f32 %v1974_v50, %v3318_v58 }
0x11a4   :  { %v1995_v52 = vadd.f32 %v1994_v17, %v1993_v47  ;;  %p2611_p6 = pnand %p2610_p5, %p2604_p2 }
0x11a5   :  { %v1996_v56 = vsel %vm292_vm1, %v1982_v9, 0.0 }
0x11a6   :  { %v1997_v57 = vadd.f32 %v1996_v56, %v1995_v52 }
0x11a8   :  { %2388 = vmatmul.mubr.msk.f32.vlgmr.msra.gmra.mxu0 %vm292_vm1, %v1997_v57 }
0x11a9   :  { %2413 = vmatprep.mubr.msk.bf16.mxu0 %vm2643_vm2, %v2641_v0  ;;  %2410 = vmatpush3.bf16.msra.mxu0 %v2429_v31 }
0x11aa   :  { %2411 = vmatprep.subr.bf16.mxu0 %v2641_v0 }
0x11ad   :  { %2412 = vmatpush3.bf16.msra.mxu0 %v2430_v32 }
0x1268   :  { %v2083_v58 = vpop.f32.mrf.mxu0 }
0x1269   :  { %v2154_v60 = vadd.f32 %v3365_v49, %v2083_v58 }
0x126a   :  { %v2389_v61 = vpop.f32.mrf.mxu0 }
0x126b   :  { %v2157_v43 = vpack.c.bf16 %v2154_v60, %v2154_v60 }
0x126d   :  { %2159 = vst.msk [vmem:[#allocation4] sm:$0xf] %vm2158_vm12, %v2157_v43 }
0x1274   :  { %v2160_v1 = vld [vmem:[#allocation4] sm:$0xf] }
0x1275   :  { %2414 = vmatmul.mubr.msk.bf16.vlgmr.msra.gmra.mxu0 %vm153_vm0, %v2160_v1 }
0x1335   :  { %v2215_v5 = vpop.f32.mrf.mxu0 }
0x1336   :  { %2221 = vst [vmem:[#allocation16] sm:$0xff] %v2215_v5 }
0x1337   :  { %v2415_v11 = vpop.f32.mrf.mxu0 }
0x1338   :  { %2614 = shalt.err (!%p2611_p6)
}
0x1339   :  { %2231 = dma.vmem_to_hbm [thread:$0]  %s2229_s27, 128, %s3461_s14, [#allocation7]   ;;  %v2218_v0 = vpop.f32.mrf.mxu0 }
0x133b   :  { %v2416_v49 = vpop.f32.mrf.mxu0 }
0x133c   :  { %2631 = dma.done.wait [#allocation7], 128  }
0x133d   :  { %2632 = vsyncadd [#allocation7], 4294967168 }
0x133e   :  { %2235 = vsyncpa [#allocation6], 1 }
0x133f   :  { %2236 = vsyncpa [#allocation9], 1 }
0x1340   :  { %2237 = vsyncpa [#allocation12], 1 }
0x1341   :  { %2238 = vsyncpa [#allocation15], 1 }
0x1342   :  { %2239 = vsyncpa [#allocation7], 1 }

</bundles_post_ra>
